<compile_context>
chip_gen: v6e
topology: v6e:2x2x1
jax: 0.10.0
libtpu: 0.0.40
codegen_flags: <defaults>
</compile_context>

<pallas_src>
import jax
import jax.numpy as jnp
from jax.experimental import pallas as pl
from jax.experimental.pallas import tpu as pltpu


TILE_M = 128   # encoder output-row tile
TILE_K = 128   # encoder reduction (K) tile
TILE_P = 128   # decoder pair tile (lane width)


def _pad_to(x, m):
    return ((x + m - 1) // m) * m


# --------------------------- encoder kernels --------------------------------
def enc_phase1_kernel(g_ref, w1_ref, b1_ref, w2_ref, out_ref, acc_ref):
    """out = relu(G_rowtile @ W1 + b1) @ W2, accumulated over the K grid axis."""
    k = pl.program_id(1)

    @pl.when(k == 0)
    def _():
        acc_ref[...] = jnp.zeros_like(acc_ref)

    acc_ref[...] += jnp.dot(g_ref[...], w1_ref[...],
                            preferred_element_type=jnp.float32)

    @pl.when(k == pl.num_programs(1) - 1)
    def _():
        h1 = jnp.maximum(acc_ref[...] + b1_ref[...], 0.0)          # (TM, HID)
        out_ref[...] = jnp.dot(h1.astype(jnp.bfloat16), w2_ref[...],
                               preferred_element_type=jnp.float32
                               ).astype(out_ref.dtype)             # (TM, EMB)


def enc_phase2_kernel(g_ref, hw_ref, out_ref, acc_ref):
    """out = G_rowtile @ H1W2, accumulated over the K grid axis."""
    k = pl.program_id(1)

    @pl.when(k == 0)
    def _():
        acc_ref[...] = jnp.zeros_like(acc_ref)

    acc_ref[...] += jnp.dot(g_ref[...], hw_ref[...],
                            preferred_element_type=jnp.float32)

    @pl.when(k == pl.num_programs(1) - 1)
    def _():
        out_ref[...] = acc_ref[...].astype(out_ref.dtype)


def encoder(G_bf16, W1_bf16, b1_f32, W2_bf16, *, tm=TILE_M, tk=TILE_K):
    Np = G_bf16.shape[0]
    HIDp = W1_bf16.shape[1]
    EMBp = W2_bf16.shape[1]
    grid = (Np // tm, Np // tk)
    cparams = pltpu.CompilerParams(
        dimension_semantics=("parallel", "arbitrary"),
        vmem_limit_bytes=32 * 1024 * 1024,
    )

    # Phase 1: H1W2 = relu(G @ W1 + b1) @ W2   -> (Np, EMBp) bf16
    h1w2 = pl.pallas_call(
        enc_phase1_kernel,
        out_shape=jax.ShapeDtypeStruct((Np, EMBp), jnp.bfloat16),
        grid_spec=pltpu.PrefetchScalarGridSpec(
            num_scalar_prefetch=0,
            grid=grid,
            in_specs=[
                pl.BlockSpec((tm, tk), lambda i, k: (i, k)),       # G row tile
                pl.BlockSpec((tk, HIDp), lambda i, k: (k, 0)),     # W1 K-slab
                pl.BlockSpec((1, HIDp), lambda i, k: (0, 0)),      # b1 resident
                pl.BlockSpec((HIDp, EMBp), lambda i, k: (0, 0)),   # W2 resident
            ],
            out_specs=pl.BlockSpec((tm, EMBp), lambda i, k: (i, 0)),
            scratch_shapes=[pltpu.VMEM((tm, HIDp), jnp.float32)],
        ),
        compiler_params=cparams,
        cost_estimate=pl.CostEstimate(
            flops=2 * Np * Np * HIDp + 2 * Np * HIDp * EMBp,
            transcendentals=0,
            bytes_accessed=2 * Np * Np + 2 * Np * HIDp + 2 * Np * EMBp,
        ),
    )(G_bf16, W1_bf16, b1_f32, W2_bf16)

    # Phase 2: H = G @ H1W2   -> (Np, EMBp) f32
    h = pl.pallas_call(
        enc_phase2_kernel,
        out_shape=jax.ShapeDtypeStruct((Np, EMBp), jnp.float32),
        grid_spec=pltpu.PrefetchScalarGridSpec(
            num_scalar_prefetch=0,
            grid=grid,
            in_specs=[
                pl.BlockSpec((tm, tk), lambda i, k: (i, k)),       # G row tile
                pl.BlockSpec((tk, EMBp), lambda i, k: (k, 0)),     # H1W2 K-slab
            ],
            out_specs=pl.BlockSpec((tm, EMBp), lambda i, k: (i, 0)),
            scratch_shapes=[pltpu.VMEM((tm, EMBp), jnp.float32)],
        ),
        compiler_params=cparams,
        cost_estimate=pl.CostEstimate(
            flops=2 * Np * Np * EMBp,
            transcendentals=0,
            bytes_accessed=2 * Np * Np + 2 * Np * EMBp + 4 * Np * EMBp,
        ),
    )(G_bf16, h1w2)
    return h


# ---------------------------- decoder kernel --------------------------------
def decoder_kernel(hdT_ref, hgT_ref, wdT_ref, out_ref):
    # hdT / hgT: (EMBp, TP) column-per-pair tiles; wdT: W_dec^T resident.
    # (h_d @ W_dec)^T == W_dec^T @ h_d^T  -> keeps the pair axis on lanes.
    t = jnp.dot(wdT_ref[...], hdT_ref[...],
                preferred_element_type=jnp.float32)                # (EMBp, TP)
    s = jnp.sum(t * hgT_ref[...], axis=0, keepdims=True)          # (1, TP) lane-dense
    out_ref[...] = jax.nn.sigmoid(s)


def decoder(hdT, hgT, WdT, *, tp=TILE_P):
    EMBp, Pp = hdT.shape
    return pl.pallas_call(
        decoder_kernel,
        out_shape=jax.ShapeDtypeStruct((1, Pp), jnp.float32),
        grid_spec=pltpu.PrefetchScalarGridSpec(
            num_scalar_prefetch=0,
            grid=(Pp // tp,),
            in_specs=[
                pl.BlockSpec((EMBp, tp), lambda p: (0, p)),        # h_d^T tile
                pl.BlockSpec((EMBp, tp), lambda p: (0, p)),        # h_g^T tile
                pl.BlockSpec((EMBp, EMBp), lambda p: (0, 0)),      # W_dec^T resident
            ],
            out_specs=pl.BlockSpec((1, tp), lambda p: (0, p)),     # lane-dense scores
        ),
        compiler_params=pltpu.CompilerParams(
            dimension_semantics=("parallel",),
            vmem_limit_bytes=32 * 1024 * 1024,
        ),
        cost_estimate=pl.CostEstimate(
            flops=2 * EMBp * EMBp * Pp + 2 * EMBp * Pp,
            transcendentals=Pp,
            bytes_accessed=4 * (2 * EMBp * Pp + EMBp * EMBp + Pp),
        ),
    )(hdT, hgT, WdT)


# -------------------------------- Model2 ------------------------------------
def model2_forward(params, G, diseases, genes, *, tm=TILE_M, tk=TILE_K, tp=TILE_P):
    N = G.shape[0]
    HID = params["W1"].shape[1]
    EMB = params["W2"].shape[1]
    P = diseases.shape[0]

    # Pad everything to hardware-native widths (zero padding keeps the math
    # on the real region exact; padded rows/cols never reach the output).
    Np = _pad_to(max(N, max(tm, tk)), max(tm, tk))
    HIDp = _pad_to(HID, 128)
    EMBp = _pad_to(EMB, 128)
    Pp = _pad_to(max(P, tp), tp)

    Gp = jnp.zeros((Np, Np), jnp.float32).at[:N, :N].set(G).astype(jnp.bfloat16)
    W1p = (jnp.zeros((Np, HIDp), jnp.float32)
           .at[:N, :HID].set(params["W1"]).astype(jnp.bfloat16))
    b1p = jnp.zeros((1, HIDp), jnp.float32).at[:, :HID].set(params["b1"])
    W2p = (jnp.zeros((HIDp, EMBp), jnp.float32)
           .at[:HID, :EMB].set(params["W2"]).astype(jnp.bfloat16))
    Wdp = jnp.zeros((EMBp, EMBp), jnp.float32).at[:EMB, :EMB].set(params["W_dec"])

    h = encoder(Gp, W1p, b1p, W2p, tm=tm, tk=tk)                   # (Np, EMBp) f32

    # Row gather is glue; transpose so the pair axis lands on lanes for the
    # lane-dense decoder.
    # TODO(synk): fuse this gather into the decoder via PrefetchScalarGridSpec
    # scalar-prefetched index vectors (per-row DMA gather) for very large P.
    d_idx = jnp.pad(diseases, (0, Pp - P))
    g_idx = jnp.pad(genes, (0, Pp - P))
    hdT = jnp.take(h, d_idx, axis=0).T                             # (EMBp, Pp)
    hgT = jnp.take(h, g_idx, axis=0).T                             # (EMBp, Pp)

    scores = decoder(hdT, hgT, Wdp.T, tp=tp)                       # (1, Pp)
    return scores[0, :P]                                           # (P,)


if __name__ == "__main__":
    # Small but padding-exercising sizes (padded internally to 256/128/128/128).
    N = 200    # nodes
    HID = 96   # encoder hidden dim
    EMB = 64   # embedding dim
    P = 100    # (disease, gene) pairs

    key = jax.random.PRNGKey(0)
    kG, kW1, kb1, kW2, kWd, kd, kg = jax.random.split(key, 7)

    # Symmetric row-normalized adjacency-like matrix.
    A = (jax.random.uniform(kG, (N, N)) > 0.9).astype(jnp.float32)
    A = jnp.maximum(A, A.T) + jnp.eye(N, dtype=jnp.float32)
    G = A / jnp.sum(A, axis=1, keepdims=True)

    params = {
        "W1": jax.random.normal(kW1, (N, HID), jnp.float32) * 0.1,
        "b1": jax.random.normal(kb1, (1, HID), jnp.float32) * 0.1,
        "W2": jax.random.normal(kW2, (HID, EMB), jnp.float32) * 0.1,
        "W_dec": jax.random.normal(kWd, (EMB, EMB), jnp.float32) * 0.1,
    }
    diseases = jax.random.randint(kd, (P,), 0, N, dtype=jnp.int32)
    genes = jax.random.randint(kg, (P,), 0, N, dtype=jnp.int32)

    scores = jax.jit(model2_forward)(params, G, diseases, genes)
    jax.block_until_ready(scores)

    # Plain-JAX f32 reference of the same forward math (kernel uses bf16 MXU
    # inputs with f32 accumulation, so tolerance is loosened accordingly).
    h1 = jnp.maximum(G @ params["W1"] + params["b1"], 0.0)
    h_ref = (G @ h1) @ params["W2"]
    hd, hg = h_ref[diseases], h_ref[genes]
    ref = jax.nn.sigmoid(jnp.sum((hd @ params["W_dec"]) * hg, axis=-1))

    assert scores.shape == (P,)
    max_err = float(jnp.max(jnp.abs(scores - ref)))
    assert jnp.allclose(scores, ref, atol=2e-2, rtol=2e-2), max_err

    print("KERNEL_OK")
</pallas_src>

<mosaic_0001>
module attributes {stable_mosaic.version = 11 : i64} {
  func.func @enc_phase1_kernel(%arg0: i32, %arg1: i32, %arg2: memref<128x128xbf16, #tpu.memory_space<vmem>>, %arg3: memref<128x128xbf16, #tpu.memory_space<vmem>>, %arg4: memref<1x128xf32, #tpu.memory_space<vmem>>, %arg5: memref<128x128xbf16, #tpu.memory_space<vmem>>, %arg6: memref<128x128xbf16, #tpu.memory_space<vmem>>, %arg7: memref<128x128xf32, #tpu.memory_space<vmem>>) attributes {dimension_semantics = [#tpu.dimension_semantics<parallel>, #tpu.dimension_semantics<arbitrary>], iteration_bounds = array<i64: 2, 2>, scalar_prefetch = 0 : i64, scratch_operands = 1 : i64, tpu.core_type = #tpu.core_type<tc>, window_params = [{transform_indices = @transform_0, window_bounds = array<i64: 128, 128>}, {transform_indices = @transform_1, window_bounds = array<i64: 128, 128>}, {pipeline_mode = #tpu.pipeline_mode<synchronous>, transform_indices = @transform_2, window_bounds = array<i64: 1, 128>}, {pipeline_mode = #tpu.pipeline_mode<synchronous>, transform_indices = @transform_3, window_bounds = array<i64: 128, 128>}, {transform_indices = @transform_4, window_bounds = array<i64: 128, 128>}]} {
    %c0_i32 = arith.constant 0 : i32
    %0 = arith.cmpi eq, %arg1, %c0_i32 : i32
    %1 = arith.extui %0 : i1 to i32
    %c0_i32_0 = arith.constant 0 : i32
    %2 = arith.cmpi ne, %1, %c0_i32_0 : i32
    scf.if %2 {
      %cst_9 = arith.constant 0.000000e+00 : f32
      %12 = vector.broadcast %cst_9 : f32 to vector<128x128xf32>
      %c0_10 = arith.constant 0 : index
      %c0_11 = arith.constant 0 : index
      %13 = vector.load %arg7[%c0_10, %c0_11] : memref<128x128xf32, #tpu.memory_space<vmem>>, vector<128x128xf32>
      tpu.vector_store %arg7[%c0_10, %c0_11], %12 {strides = array<i32>} : memref<128x128xf32, #tpu.memory_space<vmem>>, vector<128x128xf32>,
    } else {
    }
    %c0 = arith.constant 0 : index
    %c0_1 = arith.constant 0 : index
    %3 = vector.load %arg7[%c0, %c0_1] : memref<128x128xf32, #tpu.memory_space<vmem>>, vector<128x128xf32>
    %c0_2 = arith.constant 0 : index
    %c0_3 = arith.constant 0 : index
    %4 = vector.load %arg2[%c0_2, %c0_3] : memref<128x128xbf16, #tpu.memory_space<vmem>>, vector<128x128xbf16>
    %c0_4 = arith.constant 0 : index
    %c0_5 = arith.constant 0 : index
    %5 = vector.load %arg3[%c0_4, %c0_5] : memref<128x128xbf16, #tpu.memory_space<vmem>>, vector<128x128xbf16>
    %cst = arith.constant dense<0.000000e+00> : vector<128x128xf32>
    %6 = tpu.matmul %4, %5, %cst {dimension_numbers = #tpu.dot_dimension_numbers<[1], [0], [0], [1], [0, 0, 1, 1], [], []>} : vector<128x128xbf16>, vector<128x128xbf16>, vector<128x128xf32> -> vector<128x128xf32>
    %7 = arith.addf %3, %6 : vector<128x128xf32>
    %c0_6 = arith.constant 0 : index
    %c0_7 = arith.constant 0 : index
    %8 = vector.load %arg7[%c0_6, %c0_7] : memref<128x128xf32, #tpu.memory_space<vmem>>, vector<128x128xf32>
    tpu.vector_store %arg7[%c0_6, %c0_7], %7 {strides = array<i32>} : memref<128x128xf32, #tpu.memory_space<vmem>>, vector<128x128xf32>,
    %c1_i32 = arith.constant 1 : i32
    %9 = arith.cmpi eq, %arg1, %c1_i32 : i32
    %10 = arith.extui %9 : i1 to i32
    %c0_i32_8 = arith.constant 0 : i32
    %11 = arith.cmpi ne, %10, %c0_i32_8 : i32
    scf.if %11 {
      %c0_9 = arith.constant 0 : index
      %c0_10 = arith.constant 0 : index
      %12 = vector.load %arg7[%c0_9, %c0_10] : memref<128x128xf32, #tpu.memory_space<vmem>>, vector<128x128xf32>
      %c0_11 = arith.constant 0 : index
      %c0_12 = arith.constant 0 : index
      %13 = vector.load %arg4[%c0_11, %c0_12] : memref<1x128xf32, #tpu.memory_space<vmem>>, vector<1x128xf32>
      %14 = vector.broadcast %13 : vector<1x128xf32> to vector<128x128xf32>
      %15 = arith.addf %12, %14 : vector<128x128xf32>
      %cst_13 = arith.constant 0.000000e+00 : f32
      %16 = vector.broadcast %cst_13 : f32 to vector<128x128xf32>
      %17 = arith.maximumf %15, %16 : vector<128x128xf32>
      %18 = arith.truncf %17 : vector<128x128xf32> to vector<128x128xbf16>
      %c0_14 = arith.constant 0 : index
      %c0_15 = arith.constant 0 : index
      %19 = vector.load %arg5[%c0_14, %c0_15] : memref<128x128xbf16, #tpu.memory_space<vmem>>, vector<128x128xbf16>
      %cst_16 = arith.constant dense<0.000000e+00> : vector<128x128xf32>
      %20 = tpu.matmul %18, %19, %cst_16 {dimension_numbers = #tpu.dot_dimension_numbers<[1], [0], [0], [1], [0, 0, 1, 1], [], []>} : vector<128x128xbf16>, vector<128x128xbf16>, vector<128x128xf32> -> vector<128x128xf32>
      %21 = arith.truncf %20 : vector<128x128xf32> to vector<128x128xbf16>
      %c0_17 = arith.constant 0 : index
      %c0_18 = arith.constant 0 : index
      %22 = vector.load %arg6[%c0_17, %c0_18] : memref<128x128xbf16, #tpu.memory_space<vmem>>, vector<128x128xbf16>
      tpu.vector_store %arg6[%c0_17, %c0_18], %21 {strides = array<i32>} : memref<128x128xbf16, #tpu.memory_space<vmem>>, vector<128x128xbf16>,
    } else {
    }
    return
  }
  func.func @transform_0(%arg0: i32, %arg1: i32) -> (i32, i32) {
    %c0_i32 = arith.constant 0 : i32
    return %arg0, %arg1 : i32, i32
  }
  func.func @transform_1(%arg0: i32, %arg1: i32) -> (i32, i32) {
    %c0_i32 = arith.constant 0 : i32
    %c0_i32_0 = arith.constant 0 : i32
    return %arg1, %c0_i32 : i32, i32
  }
  func.func @transform_2(%arg0: i32, %arg1: i32) -> (i32, i32) {
    %c0_i32 = arith.constant 0 : i32
    %c0_i32_0 = arith.constant 0 : i32
    %c0_i32_1 = arith.constant 0 : i32
    return %c0_i32, %c0_i32_0 : i32, i32
  }
  func.func @transform_3(%arg0: i32, %arg1: i32) -> (i32, i32) {
    %c0_i32 = arith.constant 0 : i32
    %c0_i32_0 = arith.constant 0 : i32
    %c0_i32_1 = arith.constant 0 : i32
    return %c0_i32, %c0_i32_0 : i32, i32
  }
  func.func @transform_4(%arg0: i32, %arg1: i32) -> (i32, i32) {
    %c0_i32 = arith.constant 0 : i32
    %c0_i32_0 = arith.constant 0 : i32
    return %arg0, %c0_i32 : i32, i32
  }
}

module attributes {stable_mosaic.version = 11 : i64} {
  func.func @enc_phase2_kernel(%arg0: i32, %arg1: i32, %arg2: memref<128x128xbf16, #tpu.memory_space<vmem>>, %arg3: memref<128x128xbf16, #tpu.memory_space<vmem>>, %arg4: memref<128x128xf32, #tpu.memory_space<vmem>>, %arg5: memref<128x128xf32, #tpu.memory_space<vmem>>) attributes {dimension_semantics = [#tpu.dimension_semantics<parallel>, #tpu.dimension_semantics<arbitrary>], iteration_bounds = array<i64: 2, 2>, scalar_prefetch = 0 : i64, scratch_operands = 1 : i64, tpu.core_type = #tpu.core_type<tc>, window_params = [{transform_indices = @transform_0, window_bounds = array<i64: 128, 128>}, {transform_indices = @transform_1, window_bounds = array<i64: 128, 128>}, {transform_indices = @transform_2, window_bounds = array<i64: 128, 128>}]} {
    %c0_i32 = arith.constant 0 : i32
    %0 = arith.cmpi eq, %arg1, %c0_i32 : i32
    %1 = arith.extui %0 : i1 to i32
    %c0_i32_0 = arith.constant 0 : i32
    %2 = arith.cmpi ne, %1, %c0_i32_0 : i32
    scf.if %2 {
      %cst_9 = arith.constant 0.000000e+00 : f32
      %12 = vector.broadcast %cst_9 : f32 to vector<128x128xf32>
      %c0_10 = arith.constant 0 : index
      %c0_11 = arith.constant 0 : index
      %13 = vector.load %arg5[%c0_10, %c0_11] : memref<128x128xf32, #tpu.memory_space<vmem>>, vector<128x128xf32>
      tpu.vector_store %arg5[%c0_10, %c0_11], %12 {strides = array<i32>} : memref<128x128xf32, #tpu.memory_space<vmem>>, vector<128x128xf32>,
    } else {
    }
    %c0 = arith.constant 0 : index
    %c0_1 = arith.constant 0 : index
    %3 = vector.load %arg5[%c0, %c0_1] : memref<128x128xf32, #tpu.memory_space<vmem>>, vector<128x128xf32>
    %c0_2 = arith.constant 0 : index
    %c0_3 = arith.constant 0 : index
    %4 = vector.load %arg2[%c0_2, %c0_3] : memref<128x128xbf16, #tpu.memory_space<vmem>>, vector<128x128xbf16>
    %c0_4 = arith.constant 0 : index
    %c0_5 = arith.constant 0 : index
    %5 = vector.load %arg3[%c0_4, %c0_5] : memref<128x128xbf16, #tpu.memory_space<vmem>>, vector<128x128xbf16>
    %cst = arith.constant dense<0.000000e+00> : vector<128x128xf32>
    %6 = tpu.matmul %4, %5, %cst {dimension_numbers = #tpu.dot_dimension_numbers<[1], [0], [0], [1], [0, 0, 1, 1], [], []>} : vector<128x128xbf16>, vector<128x128xbf16>, vector<128x128xf32> -> vector<128x128xf32>
    %7 = arith.addf %3, %6 : vector<128x128xf32>
    %c0_6 = arith.constant 0 : index
    %c0_7 = arith.constant 0 : index
    %8 = vector.load %arg5[%c0_6, %c0_7] : memref<128x128xf32, #tpu.memory_space<vmem>>, vector<128x128xf32>
    tpu.vector_store %arg5[%c0_6, %c0_7], %7 {strides = array<i32>} : memref<128x128xf32, #tpu.memory_space<vmem>>, vector<128x128xf32>,
    %c1_i32 = arith.constant 1 : i32
    %9 = arith.cmpi eq, %arg1, %c1_i32 : i32
    %10 = arith.extui %9 : i1 to i32
    %c0_i32_8 = arith.constant 0 : i32
    %11 = arith.cmpi ne, %10, %c0_i32_8 : i32
    scf.if %11 {
      %c0_9 = arith.constant 0 : index
      %c0_10 = arith.constant 0 : index
      %12 = vector.load %arg5[%c0_9, %c0_10] : memref<128x128xf32, #tpu.memory_space<vmem>>, vector<128x128xf32>
      %c0_11 = arith.constant 0 : index
      %c0_12 = arith.constant 0 : index
      %13 = vector.load %arg4[%c0_11, %c0_12] : memref<128x128xf32, #tpu.memory_space<vmem>>, vector<128x128xf32>
      tpu.vector_store %arg4[%c0_11, %c0_12], %12 {strides = array<i32>} : memref<128x128xf32, #tpu.memory_space<vmem>>, vector<128x128xf32>,
    } else {
    }
    return
  }
  func.func @transform_0(%arg0: i32, %arg1: i32) -> (i32, i32) {
    %c0_i32 = arith.constant 0 : i32
    return %arg0, %arg1 : i32, i32
  }
  func.func @transform_1(%arg0: i32, %arg1: i32) -> (i32, i32) {
    %c0_i32 = arith.constant 0 : i32
    %c0_i32_0 = arith.constant 0 : i32
    return %arg1, %c0_i32 : i32, i32
  }
  func.func @transform_2(%arg0: i32, %arg1: i32) -> (i32, i32) {
    %c0_i32 = arith.constant 0 : i32
    %c0_i32_0 = arith.constant 0 : i32
    return %arg0, %c0_i32 : i32, i32
  }
}

module attributes {stable_mosaic.version = 11 : i64} {
  func.func @decoder_kernel(%arg0: i32, %arg1: memref<128x128xf32, #tpu.memory_space<vmem>>, %arg2: memref<128x128xf32, #tpu.memory_space<vmem>>, %arg3: memref<128x128xf32, #tpu.memory_space<vmem>>, %arg4: memref<1x128xf32, #tpu.memory_space<vmem>>) attributes {dimension_semantics = [#tpu.dimension_semantics<parallel>], iteration_bounds = array<i64: 1>, scalar_prefetch = 0 : i64, scratch_operands = 0 : i64, tpu.core_type = #tpu.core_type<tc>, window_params = [{transform_indices = @transform_0, window_bounds = array<i64: 128, 128>}, {transform_indices = @transform_1, window_bounds = array<i64: 128, 128>}, {pipeline_mode = #tpu.pipeline_mode<synchronous>, transform_indices = @transform_2, window_bounds = array<i64: 128, 128>}, {transform_indices = @transform_3, window_bounds = array<i64: 1, 128>}]} {
    %c0 = arith.constant 0 : index
    %c0_0 = arith.constant 0 : index
    %0 = vector.load %arg3[%c0, %c0_0] : memref<128x128xf32, #tpu.memory_space<vmem>>, vector<128x128xf32>
    %c0_1 = arith.constant 0 : index
    %c0_2 = arith.constant 0 : index
    %1 = vector.load %arg1[%c0_1, %c0_2] : memref<128x128xf32, #tpu.memory_space<vmem>>, vector<128x128xf32>
    %cst = arith.constant dense<0.000000e+00> : vector<128x128xf32>
    %2 = tpu.matmul %0, %1, %cst {dimension_numbers = #tpu.dot_dimension_numbers<[1], [0], [0], [1], [0, 0, 1, 1], [], []>} : vector<128x128xf32>, vector<128x128xf32>, vector<128x128xf32> -> vector<128x128xf32>
    %c0_3 = arith.constant 0 : index
    %c0_4 = arith.constant 0 : index
    %3 = vector.load %arg2[%c0_3, %c0_4] : memref<128x128xf32, #tpu.memory_space<vmem>>, vector<128x128xf32>
    %4 = arith.mulf %2, %3 : vector<128x128xf32>
    %cst_5 = arith.constant dense<0.000000e+00> : vector<128xf32>
    %5 = vector.multi_reduction <add>, %4, %cst_5 [0] : vector<128x128xf32> to vector<128xf32>
    %6 = vector.shape_cast %5 : vector<128xf32> to vector<1x128xf32>
    %7 = arith.negf %6 : vector<1x128xf32>
    %8 = math.exp %7 : vector<1x128xf32>
    %cst_6 = arith.constant 1.000000e+00 : f32
    %9 = vector.broadcast %cst_6 : f32 to vector<1x128xf32>
    %10 = arith.addf %9, %8 : vector<1x128xf32>
    %11 = arith.divf %9, %10 : vector<1x128xf32>
    %c0_7 = arith.constant 0 : index
    %c0_8 = arith.constant 0 : index
    %12 = vector.load %arg4[%c0_7, %c0_8] : memref<1x128xf32, #tpu.memory_space<vmem>>, vector<1x128xf32>
    tpu.vector_store %arg4[%c0_7, %c0_8], %11 {strides = array<i32>} : memref<1x128xf32, #tpu.memory_space<vmem>>, vector<1x128xf32>,
    return
  }
  func.func @transform_0(%arg0: i32) -> (i32, i32) {
    %c0_i32 = arith.constant 0 : i32
    %c0_i32_0 = arith.constant 0 : i32
    return %c0_i32, %arg0 : i32, i32
  }
  func.func @transform_1(%arg0: i32) -> (i32, i32) {
    %c0_i32 = arith.constant 0 : i32
    %c0_i32_0 = arith.constant 0 : i32
    return %c0_i32, %arg0 : i32, i32
  }
  func.func @transform_2(%arg0: i32) -> (i32, i32) {
    %c0_i32 = arith.constant 0 : i32
    %c0_i32_0 = arith.constant 0 : i32
    %c0_i32_1 = arith.constant 0 : i32
    return %c0_i32, %c0_i32_0 : i32, i32
  }
  func.func @transform_3(%arg0: i32) -> (i32, i32) {
    %c0_i32 = arith.constant 0 : i32
    %c0_i32_0 = arith.constant 0 : i32
    return %c0_i32, %arg0 : i32, i32
  }
}

</mosaic_0001>

<bundles_post_ra>
// kernel: model2_forward.3
= control target key start
LH: loop header
LB: loop body
LE: loop exit
PB: predicated region body
PF: predicated region fallthrough
CT: control target
= control target key end

     0   :  { %s1446_s15 = smov 0   ;;  %s1448_s16 = smov 0   ;;  %s1633_s0 = inlined_call_operand.vmem [shape: bf16[256,256], index: 0, kind: input, shape index: {}]   ;;  %s1634_s1 = inlined_call_operand.vmem [shape: bf16[256,128], index: 1, kind: input, shape index: {}]   ;;  %s1635_s2 = inlined_call_operand.vmem [shape: f32[1,128], index: 2, kind: input, shape index: {}]   ;;  %s1636_s3 = inlined_call_operand.vmem [shape: bf16[128,128], index: 3, kind: input, shape index: {}]   ;;  %s1637_s4 = inlined_call_operand.vmem [shape: bf16[256,128], index: 4, kind: output, shape index: {}]  }
   0x1   :  { %s1450_s17 = smov 0   ;;  %s1452_s18 = smov 0  }
   0x2   :  { %s1454_s19 = smov 0   ;;  %s1456_s20 = smov 0  }
   0x3   :  { %s1458_s21 = smov 0  }
   0x4 LB: > { %s23_s22 = sadd.s32 1, %s1410_s19  ;;  %s26_s23 = sadd.s32 1, %s1414_s20  ;;  %s1418_s21 = sphi %s1458_s21, %s14_s21   ;;  %s1414_s20 = sphi %s1456_s20, %s1643_s20   ;;  %s1410_s19 = sphi %s1454_s19, %s1642_s19   ;;  %s1406_s18 = sphi %s1452_s18, %s1641_s18   ;;  %s1402_s17 = sphi %s1450_s17, %s1640_s17   ;;  %s1398_s16 = sphi %s1448_s16, %s1639_s16   ;;  %s1394_s15 = sphi %s1446_s15, %s1638_s15  }
   0x5   : > { %p24_p0 = scmp.ge.s32.totalorder %s23_s22, 2  ;;  %p42_p1 = scmp.ne.s32.totalorder %s1398_s16, %s1394_s15 }
   0x6   : > { %p43_p2 = scmp.eq.s32.totalorder %s1418_s21, 0  ;;  %s35_s27 = sadd.s32 1, %s1398_s16 }
   0x7   : > { %s1645_s22 = smov (%p24_p0, %s23_s22), 0  ;;  %s1647_s23 = smov (!%p24_p0, %s26_s23), %s1414_s20 }
   0x8   : > { %p44_p3 = por %p43_p2, %p42_p1  ;;  %p28_p4 = scmp.ge.s32.totalorder %s1647_s23, 2 }
   0x9   : > { %s31_s24 = ssub.s32 %s1410_s19, %s1645_s22  ;;  %p1035_p6 = scmp.ge.s32.totalorder %s1418_s21, 4 }
   0xa   : > { %s1649_s23 = smov (%p28_p4, %s1647_s23), 0 }
   0xb   : > { %s30_s25 = ssub.s32 %s1414_s20, %s1649_s23  ;;  %168 = sbr.rel (%p1035_p6) target bundleno = 32 (0x20), region = 24 }
   0xc   : > { %s32_s26 = sor.u32 %s31_s24, %s30_s25 }
   0xd   : > { %p33_p5 = scmp.eq.s32.totalorder %s32_s26, 0 }
   0xf   : > { %s1497_s28 = scalar_select %p33_p5, %s1398_s16, %s35_s27  }
  0x10   : > { %171 = sbr.rel (!%p44_p3) target bundleno = 32 (0x20), region = 28  ;;  %s173_s29 = sand.u32 (%p44_p3), 1, %s1398_s16  }
  0x11   : > { %s1091_s30 = sshll.u32 (%p44_p3), %s1414_s20, 5  ;;  %s1036_s5 = sshll.u32 (%p44_p3), %s173_s29, 6 }
  0x12   : > { %s178_s6 = sadd.s32 (%p44_p3), %s1410_s19, %s1091_s30  ;;  %s175_s11 = scalar_lea.vmem (%p44_p3), [#allocation3], %s1036_s5 }
  0x13   : > { %s1039_s7 = sshll.u32 (%p44_p3), %s178_s6, 2 }
  0x14   : > { %s1506_s10 = scalar_lea.vmem (%p44_p3), %s1633_s0, %s1039_s7 }
  0x15   : > { %v197_v0 = vld [vmem:[%s1506_s10] sm:$0xf]  ;;  %v199_v1 = vld [vmem:[%s1506_s10 + $0x8] sm:$0xf]  ;;  %v201_v2 = vld [vmem:[%s1506_s10 + $0x10] sm:$0xf] }
  0x16   : > { %198 = vst [vmem:[%s175_s11] sm:$0xf] %v197_v0  ;;  %200 = vst [vmem:[%s175_s11 + $0x4] sm:$0xf] %v199_v1  ;;  %v203_v3 = vld [vmem:[%s1506_s10 + $0x18] sm:$0xf] }
  0x17   : > { %202 = vst [vmem:[%s175_s11 + $0x8] sm:$0xf] %v201_v2  ;;  %v205_v4 = vld [vmem:[%s1506_s10 + $0x20] sm:$0xf]  ;;  %v207_v5 = vld [vmem:[%s1506_s10 + $0x28] sm:$0xf] }
  0x18   : > { %204 = vst [vmem:[%s175_s11 + $0xc] sm:$0xf] %v203_v3  ;;  %206 = vst [vmem:[%s175_s11 + $0x10] sm:$0xf] %v205_v4  ;;  %v209_v6 = vld [vmem:[%s1506_s10 + $0x30] sm:$0xf] }
  0x19   : > { %208 = vst [vmem:[%s175_s11 + $0x14] sm:$0xf] %v207_v5  ;;  %v211_v7 = vld [vmem:[%s1506_s10 + $0x38] sm:$0xf]  ;;  %v213_v8 = vld [vmem:[%s1506_s10 + $0x40] sm:$0xf] }
  0x1a   : > { %210 = vst [vmem:[%s175_s11 + $0x18] sm:$0xf] %v209_v6  ;;  %212 = vst [vmem:[%s175_s11 + $0x1c] sm:$0xf] %v211_v7  ;;  %v215_v9 = vld [vmem:[%s1506_s10 + $0x48] sm:$0xf] }
  0x1b   : > { %214 = vst [vmem:[%s175_s11 + $0x20] sm:$0xf] %v213_v8  ;;  %v217_v10 = vld [vmem:[%s1506_s10 + $0x50] sm:$0xf]  ;;  %v219_v11 = vld [vmem:[%s1506_s10 + $0x58] sm:$0xf] }
  0x1c   : > { %216 = vst [vmem:[%s175_s11 + $0x24] sm:$0xf] %v215_v9  ;;  %218 = vst [vmem:[%s175_s11 + $0x28] sm:$0xf] %v217_v10  ;;  %v221_v12 = vld [vmem:[%s1506_s10 + $0x60] sm:$0xf] }
  0x1d   : > { %220 = vst [vmem:[%s175_s11 + $0x2c] sm:$0xf] %v219_v11  ;;  %v223_v13 = vld [vmem:[%s1506_s10 + $0x68] sm:$0xf]  ;;  %v225_v14 = vld [vmem:[%s1506_s10 + $0x70] sm:$0xf] }
  0x1e   : > { %222 = vst [vmem:[%s175_s11 + $0x30] sm:$0xf] %v221_v12  ;;  %224 = vst [vmem:[%s175_s11 + $0x34] sm:$0xf] %v223_v13  ;;  %v227_v15 = vld [vmem:[%s1506_s10 + $0x78] sm:$0xf] }
  0x1f   : > { %226 = vst [vmem:[%s175_s11 + $0x38] sm:$0xf] %v225_v14  ;;  %228 = vst [vmem:[%s175_s11 + $0x3c] sm:$0xf] %v227_v15 }
  0x20 PF: > { %p1040_p7 = scmp.ge.s32.totalorder %s1418_s21, 1  ;;  %p292_p8 = scmp.lt.s32.totalorder %s1418_s21, 5 }
  0x22   : > { %p293_p9 = pnand %p1040_p7, %p292_p8 }
  0x23   : > { %s299_s12 = sand.u32 (!%p293_p9), 1, %s1394_s15   ;;  %s1042_s13 = sshll.u32 (!%p293_p9), %s1402_s17, 4 }
  0x24   : > { %296 = sbr.rel (%p293_p9) target bundleno = 544 (0x220), region = 73  ;;  %s1041_s14 = sshll.u32 (!%p293_p9), %s299_s12, 6 }
  0x25   : > { %p331_p10 = scmp.lt.s32.totalorder (!%p293_p9), %s1042_s13, 31  ;;  %s1044_s24 = sshll.u32 (!%p293_p9), %s1406_s18, 4 }
  0x26   : > { %p337_p11 = scmp.lt.s32.totalorder (!%p293_p9), %s1044_s24, 31  ;;  %s1539_s15 = scalar_lea.vmem (!%p293_p9), [#allocation3], %s1041_s14 }
  0x27   : > { %p1046_p12 = scmp.ne.s32.totalorder (!%p293_p9), %s1402_s17, 0 }
  0x29   : > { %s1651_s13 = smov (!%p331_p10, %s1042_s13), 31  ;;  %s1653_s24 = smov (!%p337_p11, %s1044_s24), 31 }
  0x2a   : > { %s1043_s25 = sshll.u32 %s1651_s13, 2  ;;  %s1045_s30 = sshll.u32 %s1653_s24, 2 }
  0x2b   : > { %s1532_s29 = scalar_lea.vmem %s1634_s1, %s1043_s25  ;;  %s1537_s7 = scalar_lea.vmem %s1637_s4, %s1045_s30 }
  0x2c   : > { %346 = sbr.rel (%p1046_p12) target bundleno = 58 (0x3a), region = 81 }
  0x31   : > { %v1420_v16 = vmov 0.0  }
  0x32   : > { %347 = vst [vmem:[#allocation2 + $0x30] sm:$0xff] %v1420_v16  ;;  %348 = vst [vmem:[#allocation2] sm:$0xff] %v1420_v16 }
  0x33   : > { %349 = vst [vmem:[#allocation2 + $0x58] sm:$0xff] %v1420_v16  ;;  %350 = vst [vmem:[#allocation2 + $0x18] sm:$0xff] %v1420_v16 }
  0x34   : > { %351 = vst [vmem:[#allocation2 + $0x50] sm:$0xff] %v1420_v16  ;;  %352 = vst [vmem:[#allocation2 + $0x68] sm:$0xff] %v1420_v16 }
  0x35   : > { %353 = vst [vmem:[#allocation2 + $0x8] sm:$0xff] %v1420_v16  ;;  %354 = vst [vmem:[#allocation2 + $0x48] sm:$0xff] %v1420_v16 }
  0x36   : > { %355 = vst [vmem:[#allocation2 + $0x40] sm:$0xff] %v1420_v16  ;;  %356 = vst [vmem:[#allocation2 + $0x20] sm:$0xff] %v1420_v16 }
  0x37   : > { %357 = vst [vmem:[#allocation2 + $0x10] sm:$0xff] %v1420_v16  ;;  %358 = vst [vmem:[#allocation2 + $0x38] sm:$0xff] %v1420_v16 }
  0x38   : > { %359 = vst [vmem:[#allocation2 + $0x60] sm:$0xff] %v1420_v16  ;;  %360 = vst [vmem:[#allocation2 + $0x70] sm:$0xff] %v1420_v16 }
  0x39   : > { %361 = vst [vmem:[#allocation2 + $0x78] sm:$0xff] %v1420_v16  ;;  %362 = vst [vmem:[#allocation2 + $0x28] sm:$0xff] %v1420_v16 }
  0x3a PF: > { %v1340_v17 = vld [vmem:[%s1532_s29 + $0x38] sm:$0xff]   ;;  %v1341_v18 = vld [vmem:[%s1532_s29 + $0x30] sm:$0xff]   ;;  %v1342_v19 = vld [vmem:[%s1532_s29 + $0x28] sm:$0xff]   ;;  %p1063_p13 = scmp.ne.s32.totalorder %s1402_s17, 1 }
  0x3b   : > { %1187 = vmatprep.subr.bf16.mxu0 %v1340_v17  ;;  %1251 = vmatprep.subr.bf16.mxu1 %v1340_v17  ;;  %v1343_v20 = vld [vmem:[%s1532_s29 + $0x20] sm:$0xff]   ;;  %v1344_v23 = vld [vmem:[%s1532_s29 + $0x18] sm:$0xff]   ;;  %v1345_v24 = vld [vmem:[%s1532_s29 + $0x10] sm:$0xff]  }
  0x3c   : > { %1188 = vmatpush3.bf16.msra.mxu0 %v1340_v17  ;;  %1259 = vmatpush3.bf16.msra.mxu1 %v1340_v17  ;;  %v1348_v21 = vld [vmem:[%s1539_s15] sm:$0xff]   ;;  %v1346_v25 = vld [vmem:[%s1532_s29 + $0x8] sm:$0xff]   ;;  %v1352_v29 = vld [vmem:[%s1539_s15 + $0x10] sm:$0xff]  }
  0x3d   : > { %1189 = vmatprep.subr.bf16.mxu0 %v1341_v18  ;;  %1252 = vmatprep.subr.bf16.mxu1 %v1341_v18  ;;  %v1349_v22 = vld [vmem:[%s1539_s15 + $0x20] sm:$0xff]   ;;  %v1350_v27 = vld [vmem:[%s1539_s15 + $0x8] sm:$0xff]   ;;  %v1353_v30 = vld [vmem:[%s1539_s15 + $0x30] sm:$0xff]  }
  0x3e   : > { %1203 = vmatprep.mubr.bf16.mxu0 %v1348_v21  ;;  %1211 = vmatprep.mubr.bf16.mxu1 %v1349_v22  ;;  %v1347_v26 = vld [vmem:[%s1532_s29] sm:$0xff]   ;;  %v1351_v28 = vld [vmem:[%s1539_s15 + $0x28] sm:$0xff]   ;;  %v1354_v31 = vld [vmem:[%s1539_s15 + $0x18] sm:$0xff]  }
  0x3f   : > { %v1355_v32 = vld [vmem:[%s1539_s15 + $0x38] sm:$0xff]   ;;  %v373_v34 = vld [vmem:[#allocation2 + $0x10] sm:$0xff]  ;;  %v371_v38 = vld [vmem:[#allocation2 + $0x40] sm:$0xff] }
  0x40   : > { %1190 = vmatpush3.bf16.msra.mxu0 %v1341_v18  ;;  %1260 = vmatpush3.bf16.msra.mxu1 %v1341_v18  ;;  %v365_v33 = vld [vmem:[#allocation2 + $0x58] sm:$0xff]  ;;  %v363_v37 = vld [vmem:[#allocation2 + $0x30] sm:$0xff]  ;;  %v364_v49 = vld [vmem:[#allocation2] sm:$0xff] }
  0x41   : > { %1191 = vmatprep.subr.bf16.mxu0 %v1342_v19  ;;  %1253 = vmatprep.subr.bf16.mxu1 %v1342_v19  ;;  %v366_v43 = vld [vmem:[#allocation2 + $0x18] sm:$0xff]  ;;  %v372_v50 = vld [vmem:[#allocation2 + $0x20] sm:$0xff]  ;;  %v369_v55 = vld [vmem:[#allocation2 + $0x8] sm:$0xff] }
  0x42   : > { %v374_v44 = vld [vmem:[#allocation2 + $0x38] sm:$0xff]  ;;  %v367_v61 = vld [vmem:[#allocation2 + $0x50] sm:$0xff]  ;;  %v375_v62 = vld [vmem:[#allocation2 + $0x60] sm:$0xff] }
  0x43   : > { %v377_v56 = vld [vmem:[#allocation2 + $0x78] sm:$0xff]  ;;  %v370_v3 = vld [vmem:[#allocation2 + $0x48] sm:$0xff]  ;;  %v376_v10 = vld [vmem:[#allocation2 + $0x70] sm:$0xff] }
  0x44   : > { %1192 = vmatpush3.bf16.msra.mxu0 %v1342_v19  ;;  %1261 = vmatpush3.bf16.msra.mxu1 %v1342_v19  ;;  %v378_v4 = vld [vmem:[#allocation2 + $0x28] sm:$0xff] }
  0x45   : > { %1193 = vmatprep.subr.bf16.mxu0 %v1343_v20  ;;  %1254 = vmatprep.subr.bf16.mxu1 %v1343_v20  ;;  %v368_v9 = vld [vmem:[#allocation2 + $0x68] sm:$0xff] }
  0x48   : > { %1194 = vmatpush3.bf16.msra.mxu0 %v1343_v20  ;;  %1262 = vmatpush3.bf16.msra.mxu1 %v1343_v20 }
  0x49   : > { %1195 = vmatprep.subr.bf16.mxu0 %v1344_v23  ;;  %1255 = vmatprep.subr.bf16.mxu1 %v1344_v23 }
  0x4c   : > { %1196 = vmatpush3.bf16.msra.mxu0 %v1344_v23  ;;  %1263 = vmatpush3.bf16.msra.mxu1 %v1344_v23 }
  0x4d   : > { %1197 = vmatprep.subr.bf16.mxu0 %v1345_v24  ;;  %1256 = vmatprep.subr.bf16.mxu1 %v1345_v24 }
  0x50   : > { %1198 = vmatpush3.bf16.msra.mxu0 %v1345_v24  ;;  %1264 = vmatpush3.bf16.msra.mxu1 %v1345_v24 }
  0x51   : > { %1199 = vmatprep.subr.bf16.mxu0 %v1346_v25  ;;  %1257 = vmatprep.subr.bf16.mxu1 %v1346_v25 }
  0x54   : > { %1200 = vmatpush3.bf16.msra.mxu0 %v1346_v25  ;;  %1265 = vmatpush3.bf16.msra.mxu1 %v1346_v25 }
  0x55   : > { %1201 = vmatprep.subr.bf16.mxu0 %v1347_v26  ;;  %1258 = vmatprep.subr.bf16.mxu1 %v1347_v26 }
  0x58   : > { %1202 = vmatpush3.bf16.msra.mxu0 %v1347_v26  ;;  %1266 = vmatpush3.bf16.msra.mxu1 %v1347_v26 }
  0x5b   : > { %1204 = vmatmul.mubr.bf16.vlgmr.msra.gmra.mxu0 %v1350_v27  ;;  %1212 = vmatmul.mubr.bf16.vlgmr.msra.gmra.mxu1 %v1351_v28 }
  0x5c   : > { %1207 = vmatprep.mubr.bf16.mxu0 %v1352_v29  ;;  %1215 = vmatprep.mubr.bf16.mxu1 %v1353_v30 }
  0x63   : > { %1208 = vmatmul.mubr.bf16.gmra.mxu0 %v1354_v31  ;;  %1216 = vmatmul.mubr.bf16.gmra.mxu1 %v1355_v32 }
 0x11b   : > { %v1205_v35 = vpop.f32.mrf.mxu0  ;;  %v1213_v36 = vpop.f32.mrf.mxu1 }
 0x11c   : > { %v606_v39 = vadd.f32 %v1205_v35, %v365_v33  ;;  %v614_v40 = vadd.f32 %v1213_v36, %v373_v34 }
 0x11d   : > { %v541_v41 = vpop.f32.mrf.mxu0  ;;  %v573_v42 = vpop.f32.mrf.mxu1 }
 0x11e   : > { %622 = vst [vmem:[#allocation2 + $0x58] sm:$0xff] %v606_v39  ;;  %630 = vst [vmem:[#allocation2 + $0x10] sm:$0xff] %v614_v40  ;;  %v604_v45 = vadd.f32 %v541_v41, %v363_v37  ;;  %v612_v46 = vadd.f32 %v573_v42, %v371_v38 }
 0x11f   : > { %v1206_v47 = vpop.f32.mrf.mxu0  ;;  %v1214_v48 = vpop.f32.mrf.mxu1 }
 0x120   : > { %620 = vst [vmem:[#allocation2 + $0x30] sm:$0xff] %v604_v45  ;;  %628 = vst [vmem:[#allocation2 + $0x40] sm:$0xff] %v612_v46  ;;  %v607_v51 = vadd.f32 %v1206_v47, %v366_v43  ;;  %v615_v52 = vadd.f32 %v1214_v48, %v374_v44 }
 0x121   : > { %v544_v53 = vpop.f32.mrf.mxu0  ;;  %v576_v54 = vpop.f32.mrf.mxu1 }
 0x122   : > { %623 = vst [vmem:[#allocation2 + $0x18] sm:$0xff] %v607_v51  ;;  %631 = vst [vmem:[#allocation2 + $0x38] sm:$0xff] %v615_v52  ;;  %v605_v57 = vadd.f32 %v544_v53, %v364_v49  ;;  %v613_v58 = vadd.f32 %v576_v54, %v372_v50 }
 0x123   : > { %v1209_v59 = vpop.f32.mrf.mxu0  ;;  %v1217_v60 = vpop.f32.mrf.mxu1 }
 0x124   : > { %621 = vst [vmem:[#allocation2] sm:$0xff] %v605_v57  ;;  %629 = vst [vmem:[#allocation2 + $0x20] sm:$0xff] %v613_v58  ;;  %v610_v63 = vadd.f32 %v1209_v59, %v369_v55  ;;  %v618_v0 = vadd.f32 %v1217_v60, %v377_v56 }
 0x125   : > { %v557_v1 = vpop.f32.mrf.mxu0  ;;  %v589_v2 = vpop.f32.mrf.mxu1 }
 0x126   : > { %626 = vst [vmem:[#allocation2 + $0x8] sm:$0xff] %v610_v63  ;;  %634 = vst [vmem:[#allocation2 + $0x78] sm:$0xff] %v618_v0  ;;  %v608_v5 = vadd.f32 %v557_v1, %v367_v61  ;;  %v616_v6 = vadd.f32 %v589_v2, %v375_v62 }
 0x127   : > { %v1210_v7 = vpop.f32.mrf.mxu0  ;;  %v1218_v8 = vpop.f32.mrf.mxu1 }
 0x128   : > { %624 = vst [vmem:[#allocation2 + $0x50] sm:$0xff] %v608_v5  ;;  %632 = vst [vmem:[#allocation2 + $0x60] sm:$0xff] %v616_v6  ;;  %v611_v11 = vadd.f32 %v1210_v7, %v370_v3  ;;  %v619_v12 = vadd.f32 %v1218_v8, %v378_v4  ;;  %639 = sbr.rel (%p1063_p13) target bundleno = 544 (0x220), region = 85 }
 0x129   : > { %v560_v13 = vpop.f32.mrf.mxu0  ;;  %v592_v14 = vpop.f32.mrf.mxu1 }
 0x12a   : > { %627 = vst [vmem:[#allocation2 + $0x48] sm:$0xff] %v611_v11  ;;  %635 = vst [vmem:[#allocation2 + $0x28] sm:$0xff] %v619_v12  ;;  %v609_v15 = vadd.f32 %v560_v13, %v368_v9  ;;  %v617_v16 = vadd.f32 %v592_v14, %v376_v10 }
 0x12c   : > { %625 = vst [vmem:[#allocation2 + $0x68] sm:$0xff] %v609_v15  ;;  %633 = vst [vmem:[#allocation2 + $0x70] sm:$0xff] %v617_v16 }
 0x12d   : > { %v1356_v17 = vld [vmem:[%s1636_s3 + $0x38] sm:$0xff]   ;;  %v1357_v18 = vld [vmem:[%s1636_s3 + $0x30] sm:$0xff]   ;;  %v1358_v19 = vld [vmem:[%s1636_s3 + $0x28] sm:$0xff]  }
 0x12e   : > { %1219 = vmatprep.subr.bf16.mxu0 %v1356_v17  ;;  %1267 = vmatprep.subr.bf16.mxu1 %v1356_v17  ;;  %v1359_v20 = vld [vmem:[%s1636_s3 + $0x20] sm:$0xff]   ;;  %v640_v21 = vld [vmem:[#allocation2 + $0x30] sm:$0xff]  ;;  %v1360_v32 = vld [vmem:[%s1636_s3 + $0x18] sm:$0xff]  }
 0x12f   : > { %1220 = vmatpush3.bf16.msra.mxu0 %v1356_v17  ;;  %1275 = vmatpush3.bf16.msra.mxu1 %v1356_v17  ;;  %v641_v22 = vld [vmem:[#allocation2] sm:$0xff]  ;;  %v1361_v37 = vld [vmem:[%s1636_s3 + $0x10] sm:$0xff]   ;;  %v1362_v38 = vld [vmem:[%s1636_s3 + $0x8] sm:$0xff]  }
 0x130   : > { %1221 = vmatprep.subr.bf16.mxu0 %v1357_v18  ;;  %1268 = vmatprep.subr.bf16.mxu1 %v1357_v18  ;;  %v1574_v23 = vld [vmem:[%s1635_s2] ss:$0 sm:$0xff]  ;;  %v642_v39 = vld [vmem:[#allocation2 + $0x58] sm:$0xff]  ;;  %v650_v41 = vld [vmem:[#allocation2 + $0x10] sm:$0xff] }
 0x131   : > { %v663_v24 = vadd.f32 %v1574_v23, %v640_v21  ;;  %v664_v25 = vadd.f32 %v1574_v23, %v641_v22  ;;  %v648_v26 = vld [vmem:[#allocation2 + $0x40] sm:$0xff]  ;;  %v643_v40 = vld [vmem:[#allocation2 + $0x18] sm:$0xff]  ;;  %v644_v43 = vld [vmem:[#allocation2 + $0x50] sm:$0xff]  ;;  %v665_v47 = vadd.f32 %v1574_v23, %v642_v39  ;;  %v673_v49 = vadd.f32 %v1574_v23, %v650_v41 }
 0x132   : > { %v649_v27 = vld [vmem:[#allocation2 + $0x20] sm:$0xff]  ;;  %v671_v28 = vadd.f32 %v1574_v23, %v648_v26  ;;  %v651_v42 = vld [vmem:[#allocation2 + $0x38] sm:$0xff]  ;;  %v666_v48 = vadd.f32 %v1574_v23, %v643_v40  ;;  %v667_v51 = vadd.f32 %v1574_v23, %v644_v43  ;;  %v646_v60 = vld [vmem:[#allocation2 + $0x8] sm:$0xff] }
 0x133   : > { %1222 = vmatpush3.bf16.msra.mxu0 %v1357_v18  ;;  %1276 = vmatpush3.bf16.msra.mxu1 %v1357_v18  ;;  %v672_v29 = vadd.f32 %v1574_v23, %v649_v27  ;;  %v679_v30 = vmax.f32 %v663_v24, 0.0  ;;  %v680_v31 = vmax.f32 %v664_v25, 0.0  ;;  %v645_v44 = vld [vmem:[#allocation2 + $0x68] sm:$0xff]  ;;  %v652_v45 = vld [vmem:[#allocation2 + $0x60] sm:$0xff]  ;;  %v653_v46 = vld [vmem:[#allocation2 + $0x70] sm:$0xff]  ;;  %v674_v50 = vadd.f32 %v1574_v23, %v651_v42 }
 0x134   : > { %1223 = vmatprep.subr.bf16.mxu0 %v1358_v19  ;;  %1269 = vmatprep.subr.bf16.mxu1 %v1358_v19  ;;  %v687_v33 = vmax.f32 %v671_v28, 0.0  ;;  %v668_v52 = vadd.f32 %v1574_v23, %v645_v44  ;;  %v675_v53 = vadd.f32 %v1574_v23, %v652_v45  ;;  %v676_v54 = vadd.f32 %v1574_v23, %v653_v46  ;;  %v1363_v55 = vld [vmem:[%s1636_s3] sm:$0xff]   ;;  %v647_v61 = vld [vmem:[#allocation2 + $0x48] sm:$0xff]  ;;  %v654_v2 = vld [vmem:[#allocation2 + $0x78] sm:$0xff] }
 0x135   : > { %v688_v34 = vmax.f32 %v672_v29, 0.0  ;;  %v695_v35 = vpack.c.bf16 %v680_v31, %v679_v30  ;;  %v681_v56 = vmax.f32 %v665_v47, 0.0  ;;  %v682_v57 = vmax.f32 %v666_v48, 0.0  ;;  %v655_v3 = vld [vmem:[#allocation2 + $0x28] sm:$0xff] }
 0x136   : > { %v689_v58 = vmax.f32 %v673_v49, 0.0  ;;  %v690_v59 = vmax.f32 %v674_v50, 0.0  ;;  %v683_v62 = vmax.f32 %v667_v51, 0.0  ;;  %v684_v63 = vmax.f32 %v668_v52, 0.0 }
 0x137   : > { %1224 = vmatpush3.bf16.msra.mxu0 %v1358_v19  ;;  %1277 = vmatpush3.bf16.msra.mxu1 %v1358_v19  ;;  %v699_v36 = vpack.c.bf16 %v688_v34, %v687_v33  ;;  %v691_v0 = vmax.f32 %v675_v53, 0.0  ;;  %v692_v1 = vmax.f32 %v676_v54, 0.0  ;;  %v696_v4 = vpack.c.bf16 %v682_v57, %v681_v56 }
 0x138   : > { %1225 = vmatprep.subr.bf16.mxu0 %v1359_v20  ;;  %1270 = vmatprep.subr.bf16.mxu1 %v1359_v20  ;;  %v669_v5 = vadd.f32 %v1574_v23, %v646_v60  ;;  %v700_v6 = vpack.c.bf16 %v690_v59, %v689_v58  ;;  %v670_v7 = vadd.f32 %v1574_v23, %v647_v61 }
 0x139   : > { %1235 = vmatprep.mubr.bf16.mxu0 %v695_v35  ;;  %1243 = vmatprep.mubr.bf16.mxu1 %v699_v36  ;;  %v677_v8 = vadd.f32 %v1574_v23, %v654_v2  ;;  %v678_v9 = vadd.f32 %v1574_v23, %v655_v3  ;;  %v697_v10 = vpack.c.bf16 %v684_v63, %v683_v62 }
 0x13a   : > { %v701_v11 = vpack.c.bf16 %v692_v1, %v691_v0  ;;  %v685_v12 = vmax.f32 %v669_v5, 0.0  ;;  %v686_v13 = vmax.f32 %v670_v7, 0.0 }
 0x13b   : > { %1226 = vmatpush3.bf16.msra.mxu0 %v1359_v20  ;;  %1278 = vmatpush3.bf16.msra.mxu1 %v1359_v20  ;;  %v693_v14 = vmax.f32 %v677_v8, 0.0  ;;  %v694_v15 = vmax.f32 %v678_v9, 0.0 }
 0x13c   : > { %1227 = vmatprep.subr.bf16.mxu0 %v1360_v32  ;;  %1271 = vmatprep.subr.bf16.mxu1 %v1360_v32  ;;  %v698_v16 = vpack.c.bf16 %v686_v13, %v685_v12 }
 0x13d   : > { %v702_v17 = vpack.c.bf16 %v694_v15, %v693_v14 }
 0x13f   : > { %1228 = vmatpush3.bf16.msra.mxu0 %v1360_v32  ;;  %1279 = vmatpush3.bf16.msra.mxu1 %v1360_v32 }
 0x140   : > { %1229 = vmatprep.subr.bf16.mxu0 %v1361_v37  ;;  %1272 = vmatprep.subr.bf16.mxu1 %v1361_v37 }
 0x143   : > { %1230 = vmatpush3.bf16.msra.mxu0 %v1361_v37  ;;  %1280 = vmatpush3.bf16.msra.mxu1 %v1361_v37 }
 0x144   : > { %1231 = vmatprep.subr.bf16.mxu0 %v1362_v38  ;;  %1273 = vmatprep.subr.bf16.mxu1 %v1362_v38 }
 0x147   : > { %1232 = vmatpush3.bf16.msra.mxu0 %v1362_v38  ;;  %1281 = vmatpush3.bf16.msra.mxu1 %v1362_v38 }
 0x148   : > { %1233 = vmatprep.subr.bf16.mxu0 %v1363_v55  ;;  %1274 = vmatprep.subr.bf16.mxu1 %v1363_v55 }
 0x14b   : > { %1234 = vmatpush3.bf16.msra.mxu0 %v1363_v55  ;;  %1282 = vmatpush3.bf16.msra.mxu1 %v1363_v55 }
 0x14e   : > { %1236 = vmatmul.mubr.bf16.vlgmr.msra.gmra.mxu0 %v696_v4  ;;  %1244 = vmatmul.mubr.bf16.vlgmr.msra.gmra.mxu1 %v700_v6 }
 0x14f   : > { %1239 = vmatprep.mubr.bf16.mxu0 %v697_v10  ;;  %1247 = vmatprep.mubr.bf16.mxu1 %v701_v11 }
 0x156   : > { %1240 = vmatmul.mubr.bf16.gmra.mxu0 %v698_v16  ;;  %1248 = vmatmul.mubr.bf16.gmra.mxu1 %v702_v17 }
 0x20e   : > { %v1237_v18 = vpop.f32.mrf.mxu0  ;;  %v1245_v19 = vpop.f32.mrf.mxu1 }
 0x210   : > { %v801_v20 = vpop.f32.mrf.mxu0  ;;  %v833_v21 = vpop.f32.mrf.mxu1 }
 0x212   : > { %v1238_v22 = vpop.f32.mrf.mxu0  ;;  %v1246_v23 = vpop.f32.mrf.mxu1 }
 0x213   : > { %v1116_v24 = vpack.c.bf16 %v1238_v22, %v1237_v18  ;;  %v1136_v25 = vpack.c.bf16 %v1246_v23, %v1245_v19 }
 0x214   : > { %v804_v26 = vpop.f32.mrf.mxu0  ;;  %v836_v27 = vpop.f32.mrf.mxu1 }
 0x215   : > { %1148 = vst [vmem:[%s1537_s7 + $0x8] sm:$0xff] %v1116_v24   ;;  %1152 = vst [vmem:[%s1537_s7 + $0x28] sm:$0xff] %v1136_v25   ;;  %v1111_v28 = vpack.c.bf16 %v804_v26, %v801_v20  ;;  %v1131_v29 = vpack.c.bf16 %v836_v27, %v833_v21 }
 0x216   : > { %v1241_v30 = vpop.f32.mrf.mxu0  ;;  %v1249_v31 = vpop.f32.mrf.mxu1 }
 0x217   : > { %1112 = vst [vmem:[%s1537_s7] sm:$0xff] %v1111_v28   ;;  %1151 = vst [vmem:[%s1537_s7 + $0x20] sm:$0xff] %v1131_v29  }
 0x218   : > { %v817_v32 = vpop.f32.mrf.mxu0  ;;  %v849_v33 = vpop.f32.mrf.mxu1 }
 0x21a   : > { %v1242_v34 = vpop.f32.mrf.mxu0  ;;  %v1250_v35 = vpop.f32.mrf.mxu1 }
 0x21b   : > { %v1126_v36 = vpack.c.bf16 %v1242_v34, %v1241_v30  ;;  %v1146_v37 = vpack.c.bf16 %v1250_v35, %v1249_v31 }
 0x21c   : > { %v820_v38 = vpop.f32.mrf.mxu0  ;;  %v852_v39 = vpop.f32.mrf.mxu1 }
 0x21d   : > { %1150 = vst [vmem:[%s1537_s7 + $0x18] sm:$0xff] %v1126_v36   ;;  %1154 = vst [vmem:[%s1537_s7 + $0x38] sm:$0xff] %v1146_v37   ;;  %v1121_v40 = vpack.c.bf16 %v820_v38, %v817_v32  ;;  %v1141_v41 = vpack.c.bf16 %v852_v39, %v849_v33 }
 0x21f   : > { %1149 = vst [vmem:[%s1537_s7 + $0x10] sm:$0xff] %v1121_v40   ;;  %1153 = vst [vmem:[%s1537_s7 + $0x30] sm:$0xff] %v1141_v41  }
 0x220 PF: > { %s14_s21 = sadd.s32 1, %s1418_s21   ;;  %s1638_s15 = smov %s1398_s16 }
 0x221   : > { %p11_p0 = scmp.ge.s32.totalorder %s14_s21, 6   ;;  %s1639_s16 = smov %s1497_s28 }
 0x222   : > { %s1640_s17 = smov %s1410_s19  ;;  %s1641_s18 = smov %s1414_s20 }
 0x223   : > { %s1642_s19 = smov %s1645_s22  ;;  %s1643_s20 = smov %s1649_s23 }
 0x224   :  { %13 = sbr.rel (!%p11_p0) target bundleno = 4 (0x4), region = 123 }

// kernel: model2_forward.4
= control target key start
LH: loop header
LB: loop body
LE: loop exit
PB: predicated region body
PF: predicated region fallthrough
CT: control target
= control target key end

     0   :  { %s950_s9 = smov 0   ;;  %s952_s10 = smov 0   ;;  %s1100_s0 = inlined_call_operand.vmem [shape: bf16[256,256], index: 0, kind: input, shape index: {}]   ;;  %s1101_s1 = inlined_call_operand.vmem [shape: bf16[256,128], index: 1, kind: input, shape index: {}]   ;;  %s1102_s2 = inlined_call_operand.vmem [shape: f32[256,128], index: 2, kind: output, shape index: {}]  }
   0x1   :  { %s954_s11 = smov 0   ;;  %s956_s12 = smov 0  }
   0x2   :  { %s958_s13 = smov 0   ;;  %s960_s14 = smov 0  }
   0x3   :  { %s962_s15 = smov 0  }
   0x4 LB: > { %s21_s16 = sadd.s32 1, %s924_s13  ;;  %s24_s17 = sadd.s32 1, %s928_s14  ;;  %s932_s15 = sphi %s962_s15, %s12_s15   ;;  %s928_s14 = sphi %s960_s14, %s1108_s14   ;;  %s924_s13 = sphi %s958_s13, %s1107_s13   ;;  %s920_s12 = sphi %s956_s12, %s1106_s12   ;;  %s916_s11 = sphi %s954_s11, %s1105_s11   ;;  %s912_s10 = sphi %s952_s10, %s1104_s10   ;;  %s908_s9 = sphi %s950_s9, %s1103_s9  }
   0x5   : > { %p22_p0 = scmp.ge.s32.totalorder %s21_s16, 2  ;;  %p40_p1 = scmp.ne.s32.totalorder %s912_s10, %s908_s9 }
   0x6   : > { %p41_p2 = scmp.eq.s32.totalorder %s932_s15, 0  ;;  %s33_s21 = sadd.s32 1, %s912_s10 }
   0x7   : > { %s1110_s16 = smov (%p22_p0, %s21_s16), 0  ;;  %s1112_s17 = smov (!%p22_p0, %s24_s17), %s928_s14 }
   0x8   : > { %p42_p3 = por %p41_p2, %p40_p1  ;;  %p26_p4 = scmp.ge.s32.totalorder %s1112_s17, 2 }
   0x9   : > { %s29_s18 = ssub.s32 %s924_s13, %s1110_s16  ;;  %p709_p6 = scmp.ge.s32.totalorder %s932_s15, 4 }
   0xa   : > { %s1114_s17 = smov (%p26_p4, %s1112_s17), 0 }
   0xb   : > { %s28_s19 = ssub.s32 %s928_s14, %s1114_s17  ;;  %118 = sbr.rel (%p709_p6) target bundleno = 32 (0x20), region = 16 }
   0xc   : > { %s30_s20 = sor.u32 %s29_s18, %s28_s19 }
   0xd   : > { %p31_p5 = scmp.eq.s32.totalorder %s30_s20, 0 }
   0xf   : > { %s1001_s22 = scalar_select %p31_p5, %s912_s10, %s33_s21  }
  0x10   : > { %121 = sbr.rel (!%p42_p3) target bundleno = 32 (0x20), region = 20  ;;  %s123_s23 = sand.u32 (%p42_p3), 1, %s912_s10  }
  0x11   : > { %s740_s24 = sshll.u32 (%p42_p3), %s928_s14, 5  ;;  %s710_s25 = sshll.u32 (%p42_p3), %s123_s23, 6 }
  0x12   : > { %s128_s26 = sadd.s32 (%p42_p3), %s924_s13, %s740_s24  ;;  %s125_s3 = scalar_lea.vmem (%p42_p3), [#allocation3], %s710_s25 }
  0x13   : > { %s713_s27 = sshll.u32 (%p42_p3), %s128_s26, 2 }
  0x14   : > { %s1010_s30 = scalar_lea.vmem (%p42_p3), %s1100_s0, %s713_s27 }
  0x15   : > { %v147_v0 = vld [vmem:[%s1010_s30] sm:$0xf]  ;;  %v149_v1 = vld [vmem:[%s1010_s30 + $0x8] sm:$0xf]  ;;  %v151_v2 = vld [vmem:[%s1010_s30 + $0x10] sm:$0xf] }
  0x16   : > { %148 = vst [vmem:[%s125_s3] sm:$0xf] %v147_v0  ;;  %150 = vst [vmem:[%s125_s3 + $0x4] sm:$0xf] %v149_v1  ;;  %v153_v3 = vld [vmem:[%s1010_s30 + $0x18] sm:$0xf] }
  0x17   : > { %152 = vst [vmem:[%s125_s3 + $0x8] sm:$0xf] %v151_v2  ;;  %v155_v4 = vld [vmem:[%s1010_s30 + $0x20] sm:$0xf]  ;;  %v157_v5 = vld [vmem:[%s1010_s30 + $0x28] sm:$0xf] }
  0x18   : > { %154 = vst [vmem:[%s125_s3 + $0xc] sm:$0xf] %v153_v3  ;;  %156 = vst [vmem:[%s125_s3 + $0x10] sm:$0xf] %v155_v4  ;;  %v159_v6 = vld [vmem:[%s1010_s30 + $0x30] sm:$0xf] }
  0x19   : > { %158 = vst [vmem:[%s125_s3 + $0x14] sm:$0xf] %v157_v5  ;;  %v161_v7 = vld [vmem:[%s1010_s30 + $0x38] sm:$0xf]  ;;  %v163_v8 = vld [vmem:[%s1010_s30 + $0x40] sm:$0xf] }
  0x1a   : > { %160 = vst [vmem:[%s125_s3 + $0x18] sm:$0xf] %v159_v6  ;;  %162 = vst [vmem:[%s125_s3 + $0x1c] sm:$0xf] %v161_v7  ;;  %v165_v9 = vld [vmem:[%s1010_s30 + $0x48] sm:$0xf] }
  0x1b   : > { %164 = vst [vmem:[%s125_s3 + $0x20] sm:$0xf] %v163_v8  ;;  %v167_v10 = vld [vmem:[%s1010_s30 + $0x50] sm:$0xf]  ;;  %v169_v11 = vld [vmem:[%s1010_s30 + $0x58] sm:$0xf] }
  0x1c   : > { %166 = vst [vmem:[%s125_s3 + $0x24] sm:$0xf] %v165_v9  ;;  %168 = vst [vmem:[%s125_s3 + $0x28] sm:$0xf] %v167_v10  ;;  %v171_v12 = vld [vmem:[%s1010_s30 + $0x60] sm:$0xf] }
  0x1d   : > { %170 = vst [vmem:[%s125_s3 + $0x2c] sm:$0xf] %v169_v11  ;;  %v173_v13 = vld [vmem:[%s1010_s30 + $0x68] sm:$0xf]  ;;  %v175_v14 = vld [vmem:[%s1010_s30 + $0x70] sm:$0xf] }
  0x1e   : > { %172 = vst [vmem:[%s125_s3 + $0x30] sm:$0xf] %v171_v12  ;;  %174 = vst [vmem:[%s125_s3 + $0x34] sm:$0xf] %v173_v13  ;;  %v177_v15 = vld [vmem:[%s1010_s30 + $0x78] sm:$0xf] }
  0x1f   : > { %176 = vst [vmem:[%s125_s3 + $0x38] sm:$0xf] %v175_v14  ;;  %178 = vst [vmem:[%s125_s3 + $0x3c] sm:$0xf] %v177_v15 }
  0x20 PF: > { %p714_p7 = scmp.ge.s32.totalorder %s932_s15, 1  ;;  %p242_p8 = scmp.lt.s32.totalorder %s932_s15, 5 }
  0x22   : > { %p243_p9 = pnand %p714_p7, %p242_p8 }
  0x23   : > { %s249_s4 = sand.u32 (!%p243_p9), 1, %s908_s9   ;;  %s716_s5 = sshll.u32 (!%p243_p9), %s916_s11, 4 }
  0x24   : > { %246 = sbr.rel (%p243_p9) target bundleno = 310 (0x136), region = 65  ;;  %s715_s6 = sshll.u32 (!%p243_p9), %s249_s4, 6 }
  0x25   : > { %p277_p10 = scmp.lt.s32.totalorder (!%p243_p9), %s716_s5, 31  ;;  %s718_s7 = sshll.u32 (!%p243_p9), %s920_s12, 4 }
  0x26   : > { %p283_p11 = scmp.lt.s32.totalorder (!%p243_p9), %s718_s7, 31  ;;  %s1043_s9 = scalar_lea.vmem (!%p243_p9), [#allocation3], %s715_s6 }
  0x27   : > { %p720_p12 = scmp.ne.s32.totalorder (!%p243_p9), %s916_s11, 0 }
  0x29   : > { %s1116_s5 = smov (!%p277_p10, %s716_s5), 31  ;;  %s1118_s7 = smov (!%p283_p11, %s718_s7), 31 }
  0x2a   : > { %s717_s8 = sshll.u32 %s1116_s5, 2  ;;  %s719_s21 = sshll.u32 %s1118_s7, 3 }
  0x2b   : > { %s1036_s20 = scalar_lea.vmem %s1101_s1, %s717_s8  ;;  %s1041_s25 = scalar_lea.vmem %s1102_s2, %s719_s21 }
  0x2c   : > { %292 = sbr.rel (%p720_p12) target bundleno = 58 (0x3a), region = 73 }
  0x31   : > { %v934_v16 = vmov 0.0  }
  0x32   : > { %293 = vst [vmem:[#allocation2 + $0x30] sm:$0xff] %v934_v16  ;;  %294 = vst [vmem:[#allocation2] sm:$0xff] %v934_v16 }
  0x33   : > { %295 = vst [vmem:[#allocation2 + $0x58] sm:$0xff] %v934_v16  ;;  %296 = vst [vmem:[#allocation2 + $0x18] sm:$0xff] %v934_v16 }
  0x34   : > { %297 = vst [vmem:[#allocation2 + $0x50] sm:$0xff] %v934_v16  ;;  %298 = vst [vmem:[#allocation2 + $0x68] sm:$0xff] %v934_v16 }
  0x35   : > { %299 = vst [vmem:[#allocation2 + $0x8] sm:$0xff] %v934_v16  ;;  %300 = vst [vmem:[#allocation2 + $0x48] sm:$0xff] %v934_v16 }
  0x36   : > { %301 = vst [vmem:[#allocation2 + $0x40] sm:$0xff] %v934_v16  ;;  %302 = vst [vmem:[#allocation2 + $0x20] sm:$0xff] %v934_v16 }
  0x37   : > { %303 = vst [vmem:[#allocation2 + $0x10] sm:$0xff] %v934_v16  ;;  %304 = vst [vmem:[#allocation2 + $0x38] sm:$0xff] %v934_v16 }
  0x38   : > { %305 = vst [vmem:[#allocation2 + $0x60] sm:$0xff] %v934_v16  ;;  %306 = vst [vmem:[#allocation2 + $0x70] sm:$0xff] %v934_v16 }
  0x39   : > { %307 = vst [vmem:[#allocation2 + $0x78] sm:$0xff] %v934_v16  ;;  %308 = vst [vmem:[#allocation2 + $0x28] sm:$0xff] %v934_v16 }
  0x3a PF: > { %v862_v17 = vld [vmem:[%s1036_s20 + $0x38] sm:$0xff]   ;;  %v863_v18 = vld [vmem:[%s1036_s20 + $0x30] sm:$0xff]   ;;  %v864_v19 = vld [vmem:[%s1036_s20 + $0x28] sm:$0xff]   ;;  %p737_p13 = scmp.ne.s32.totalorder %s916_s11, 1 }
  0x3b   : > { %757 = vmatprep.subr.bf16.mxu0 %v862_v17  ;;  %789 = vmatprep.subr.bf16.mxu1 %v862_v17  ;;  %v865_v20 = vld [vmem:[%s1036_s20 + $0x20] sm:$0xff]   ;;  %v866_v23 = vld [vmem:[%s1036_s20 + $0x18] sm:$0xff]   ;;  %v867_v24 = vld [vmem:[%s1036_s20 + $0x10] sm:$0xff]  }
  0x3c   : > { %758 = vmatpush3.bf16.msra.mxu0 %v862_v17  ;;  %797 = vmatpush3.bf16.msra.mxu1 %v862_v17  ;;  %v870_v21 = vld [vmem:[%s1043_s9] sm:$0xff]   ;;  %v868_v25 = vld [vmem:[%s1036_s20 + $0x8] sm:$0xff]   ;;  %v874_v29 = vld [vmem:[%s1043_s9 + $0x10] sm:$0xff]  }
  0x3d   : > { %759 = vmatprep.subr.bf16.mxu0 %v863_v18  ;;  %790 = vmatprep.subr.bf16.mxu1 %v863_v18  ;;  %v871_v22 = vld [vmem:[%s1043_s9 + $0x20] sm:$0xff]   ;;  %v872_v27 = vld [vmem:[%s1043_s9 + $0x8] sm:$0xff]   ;;  %v875_v30 = vld [vmem:[%s1043_s9 + $0x30] sm:$0xff]  }
  0x3e   : > { %773 = vmatprep.mubr.bf16.mxu0 %v870_v21  ;;  %781 = vmatprep.mubr.bf16.mxu1 %v871_v22  ;;  %v869_v26 = vld [vmem:[%s1036_s20] sm:$0xff]   ;;  %v873_v28 = vld [vmem:[%s1043_s9 + $0x28] sm:$0xff]   ;;  %v876_v31 = vld [vmem:[%s1043_s9 + $0x18] sm:$0xff]  }
  0x3f   : > { %v877_v32 = vld [vmem:[%s1043_s9 + $0x38] sm:$0xff]   ;;  %v319_v34 = vld [vmem:[#allocation2 + $0x10] sm:$0xff]  ;;  %v317_v38 = vld [vmem:[#allocation2 + $0x40] sm:$0xff] }
  0x40   : > { %760 = vmatpush3.bf16.msra.mxu0 %v863_v18  ;;  %798 = vmatpush3.bf16.msra.mxu1 %v863_v18  ;;  %v311_v33 = vld [vmem:[#allocation2 + $0x58] sm:$0xff]  ;;  %v309_v37 = vld [vmem:[#allocation2 + $0x30] sm:$0xff]  ;;  %v310_v49 = vld [vmem:[#allocation2] sm:$0xff] }
  0x41   : > { %761 = vmatprep.subr.bf16.mxu0 %v864_v19  ;;  %791 = vmatprep.subr.bf16.mxu1 %v864_v19  ;;  %v312_v43 = vld [vmem:[#allocation2 + $0x18] sm:$0xff]  ;;  %v318_v50 = vld [vmem:[#allocation2 + $0x20] sm:$0xff]  ;;  %v315_v55 = vld [vmem:[#allocation2 + $0x8] sm:$0xff] }
  0x42   : > { %v320_v44 = vld [vmem:[#allocation2 + $0x38] sm:$0xff]  ;;  %v313_v61 = vld [vmem:[#allocation2 + $0x50] sm:$0xff]  ;;  %v321_v62 = vld [vmem:[#allocation2 + $0x60] sm:$0xff] }
  0x43   : > { %v323_v56 = vld [vmem:[#allocation2 + $0x78] sm:$0xff]  ;;  %v316_v3 = vld [vmem:[#allocation2 + $0x48] sm:$0xff]  ;;  %v322_v10 = vld [vmem:[#allocation2 + $0x70] sm:$0xff] }
  0x44   : > { %762 = vmatpush3.bf16.msra.mxu0 %v864_v19  ;;  %799 = vmatpush3.bf16.msra.mxu1 %v864_v19  ;;  %v324_v4 = vld [vmem:[#allocation2 + $0x28] sm:$0xff] }
  0x45   : > { %763 = vmatprep.subr.bf16.mxu0 %v865_v20  ;;  %792 = vmatprep.subr.bf16.mxu1 %v865_v20  ;;  %v314_v9 = vld [vmem:[#allocation2 + $0x68] sm:$0xff] }
  0x48   : > { %764 = vmatpush3.bf16.msra.mxu0 %v865_v20  ;;  %800 = vmatpush3.bf16.msra.mxu1 %v865_v20 }
  0x49   : > { %765 = vmatprep.subr.bf16.mxu0 %v866_v23  ;;  %793 = vmatprep.subr.bf16.mxu1 %v866_v23 }
  0x4c   : > { %766 = vmatpush3.bf16.msra.mxu0 %v866_v23  ;;  %801 = vmatpush3.bf16.msra.mxu1 %v866_v23 }
  0x4d   : > { %767 = vmatprep.subr.bf16.mxu0 %v867_v24  ;;  %794 = vmatprep.subr.bf16.mxu1 %v867_v24 }
  0x50   : > { %768 = vmatpush3.bf16.msra.mxu0 %v867_v24  ;;  %802 = vmatpush3.bf16.msra.mxu1 %v867_v24 }
  0x51   : > { %769 = vmatprep.subr.bf16.mxu0 %v868_v25  ;;  %795 = vmatprep.subr.bf16.mxu1 %v868_v25 }
  0x54   : > { %770 = vmatpush3.bf16.msra.mxu0 %v868_v25  ;;  %803 = vmatpush3.bf16.msra.mxu1 %v868_v25 }
  0x55   : > { %771 = vmatprep.subr.bf16.mxu0 %v869_v26  ;;  %796 = vmatprep.subr.bf16.mxu1 %v869_v26 }
  0x58   : > { %772 = vmatpush3.bf16.msra.mxu0 %v869_v26  ;;  %804 = vmatpush3.bf16.msra.mxu1 %v869_v26 }
  0x5b   : > { %774 = vmatmul.mubr.bf16.vlgmr.msra.gmra.mxu0 %v872_v27  ;;  %782 = vmatmul.mubr.bf16.vlgmr.msra.gmra.mxu1 %v873_v28 }
  0x5c   : > { %777 = vmatprep.mubr.bf16.mxu0 %v874_v29  ;;  %785 = vmatprep.mubr.bf16.mxu1 %v875_v30 }
  0x63   : > { %778 = vmatmul.mubr.bf16.gmra.mxu0 %v876_v31  ;;  %786 = vmatmul.mubr.bf16.gmra.mxu1 %v877_v32 }
 0x11b   : > { %v775_v35 = vpop.f32.mrf.mxu0  ;;  %v783_v36 = vpop.f32.mrf.mxu1 }
 0x11c   : > { %v552_v39 = vadd.f32 %v775_v35, %v311_v33  ;;  %v560_v40 = vadd.f32 %v783_v36, %v319_v34 }
 0x11d   : > { %v487_v41 = vpop.f32.mrf.mxu0  ;;  %v519_v42 = vpop.f32.mrf.mxu1 }
 0x11e   : > { %568 = vst [vmem:[#allocation2 + $0x58] sm:$0xff] %v552_v39  ;;  %576 = vst [vmem:[#allocation2 + $0x10] sm:$0xff] %v560_v40  ;;  %v550_v45 = vadd.f32 %v487_v41, %v309_v37  ;;  %v558_v46 = vadd.f32 %v519_v42, %v317_v38 }
 0x11f   : > { %v776_v47 = vpop.f32.mrf.mxu0  ;;  %v784_v48 = vpop.f32.mrf.mxu1 }
 0x120   : > { %566 = vst [vmem:[#allocation2 + $0x30] sm:$0xff] %v550_v45  ;;  %574 = vst [vmem:[#allocation2 + $0x40] sm:$0xff] %v558_v46  ;;  %v553_v51 = vadd.f32 %v776_v47, %v312_v43  ;;  %v561_v52 = vadd.f32 %v784_v48, %v320_v44 }
 0x121   : > { %v490_v53 = vpop.f32.mrf.mxu0  ;;  %v522_v54 = vpop.f32.mrf.mxu1 }
 0x122   : > { %569 = vst [vmem:[#allocation2 + $0x18] sm:$0xff] %v553_v51  ;;  %577 = vst [vmem:[#allocation2 + $0x38] sm:$0xff] %v561_v52  ;;  %v551_v57 = vadd.f32 %v490_v53, %v310_v49  ;;  %v559_v58 = vadd.f32 %v522_v54, %v318_v50 }
 0x123   : > { %v779_v59 = vpop.f32.mrf.mxu0  ;;  %v787_v60 = vpop.f32.mrf.mxu1 }
 0x124   : > { %567 = vst [vmem:[#allocation2] sm:$0xff] %v551_v57  ;;  %575 = vst [vmem:[#allocation2 + $0x20] sm:$0xff] %v559_v58  ;;  %v556_v63 = vadd.f32 %v779_v59, %v315_v55  ;;  %v564_v0 = vadd.f32 %v787_v60, %v323_v56 }
 0x125   : > { %v503_v1 = vpop.f32.mrf.mxu0  ;;  %v535_v2 = vpop.f32.mrf.mxu1 }
 0x126   : > { %572 = vst [vmem:[#allocation2 + $0x8] sm:$0xff] %v556_v63  ;;  %580 = vst [vmem:[#allocation2 + $0x78] sm:$0xff] %v564_v0  ;;  %v554_v5 = vadd.f32 %v503_v1, %v313_v61  ;;  %v562_v6 = vadd.f32 %v535_v2, %v321_v62 }
 0x127   : > { %v780_v7 = vpop.f32.mrf.mxu0  ;;  %v788_v8 = vpop.f32.mrf.mxu1 }
 0x128   : > { %570 = vst [vmem:[#allocation2 + $0x50] sm:$0xff] %v554_v5  ;;  %578 = vst [vmem:[#allocation2 + $0x60] sm:$0xff] %v562_v6  ;;  %v557_v11 = vadd.f32 %v780_v7, %v316_v3  ;;  %v565_v12 = vadd.f32 %v788_v8, %v324_v4  ;;  %585 = sbr.rel (%p737_p13) target bundleno = 310 (0x136), region = 77 }
 0x129   : > { %v506_v13 = vpop.f32.mrf.mxu0  ;;  %v538_v14 = vpop.f32.mrf.mxu1 }
 0x12a   : > { %573 = vst [vmem:[#allocation2 + $0x48] sm:$0xff] %v557_v11  ;;  %581 = vst [vmem:[#allocation2 + $0x28] sm:$0xff] %v565_v12  ;;  %v555_v15 = vadd.f32 %v506_v13, %v314_v9  ;;  %v563_v16 = vadd.f32 %v538_v14, %v322_v10 }
 0x12c   : > { %571 = vst [vmem:[#allocation2 + $0x68] sm:$0xff] %v555_v15  ;;  %579 = vst [vmem:[#allocation2 + $0x70] sm:$0xff] %v563_v16 }
 0x12d   : > { %v586_v17 = vld [vmem:[#allocation2 + $0x30] sm:$0xff]  ;;  %v587_v18 = vld [vmem:[#allocation2] sm:$0xff]  ;;  %v588_v19 = vld [vmem:[#allocation2 + $0x58] sm:$0xff] }
 0x12e   : > { %602 = vst [vmem:[%s1041_s25] sm:$0xff] %v586_v17  ;;  %603 = vst [vmem:[%s1041_s25 + $0x8] sm:$0xff] %v587_v18  ;;  %v589_v20 = vld [vmem:[#allocation2 + $0x18] sm:$0xff]  ;;  %v592_v23 = vld [vmem:[#allocation2 + $0x8] sm:$0xff] }
 0x12f   : > { %604 = vst [vmem:[%s1041_s25 + $0x10] sm:$0xff] %v588_v19  ;;  %v590_v21 = vld [vmem:[#allocation2 + $0x50] sm:$0xff]  ;;  %605 = vst [vmem:[%s1041_s25 + $0x18] sm:$0xff] %v589_v20  ;;  %v594_v25 = vld [vmem:[#allocation2 + $0x40] sm:$0xff] }
 0x130   : > { %606 = vst [vmem:[%s1041_s25 + $0x20] sm:$0xff] %v590_v21  ;;  %608 = vst [vmem:[%s1041_s25 + $0x30] sm:$0xff] %v592_v23  ;;  %v595_v26 = vld [vmem:[#allocation2 + $0x20] sm:$0xff]  ;;  %v596_v27 = vld [vmem:[#allocation2 + $0x10] sm:$0xff] }
 0x131   : > { %v593_v24 = vld [vmem:[#allocation2 + $0x48] sm:$0xff]  ;;  %610 = vst [vmem:[%s1041_s25 + $0x40] sm:$0xff] %v594_v25  ;;  %v597_v28 = vld [vmem:[#allocation2 + $0x38] sm:$0xff]  ;;  %611 = vst [vmem:[%s1041_s25 + $0x48] sm:$0xff] %v595_v26 }
 0x132   : > { %609 = vst [vmem:[%s1041_s25 + $0x38] sm:$0xff] %v593_v24  ;;  %612 = vst [vmem:[%s1041_s25 + $0x50] sm:$0xff] %v596_v27  ;;  %v598_v29 = vld [vmem:[#allocation2 + $0x60] sm:$0xff]  ;;  %v600_v31 = vld [vmem:[#allocation2 + $0x78] sm:$0xff] }
 0x133   : > { %v591_v22 = vld [vmem:[#allocation2 + $0x68] sm:$0xff]  ;;  %613 = vst [vmem:[%s1041_s25 + $0x58] sm:$0xff] %v597_v28  ;;  %v599_v30 = vld [vmem:[#allocation2 + $0x70] sm:$0xff]  ;;  %614 = vst [vmem:[%s1041_s25 + $0x60] sm:$0xff] %v598_v29 }
 0x134   : > { %607 = vst [vmem:[%s1041_s25 + $0x28] sm:$0xff] %v591_v22  ;;  %615 = vst [vmem:[%s1041_s25 + $0x68] sm:$0xff] %v599_v30  ;;  %v601_v32 = vld [vmem:[#allocation2 + $0x28] sm:$0xff] }
 0x135   : > { %616 = vst [vmem:[%s1041_s25 + $0x70] sm:$0xff] %v600_v31  ;;  %617 = vst [vmem:[%s1041_s25 + $0x78] sm:$0xff] %v601_v32 }
 0x136 PF: > { %s12_s15 = sadd.s32 1, %s932_s15   ;;  %s1103_s9 = smov %s912_s10 }
 0x137   : > { %p9_p0 = scmp.ge.s32.totalorder %s12_s15, 6   ;;  %s1104_s10 = smov %s1001_s22 }
 0x138   : > { %s1105_s11 = smov %s924_s13  ;;  %s1106_s12 = smov %s928_s14 }
 0x139   : > { %s1107_s13 = smov %s1110_s16  ;;  %s1108_s14 = smov %s1114_s17 }
 0x13a   :  { %11 = sbr.rel (!%p9_p0) target bundleno = 4 (0x4), region = 115 }

// kernel: model2_forward.5
= control target key start
LH: loop header
LB: loop body
LE: loop exit
PB: predicated region body
PF: predicated region fallthrough
CT: control target
= control target key end

     0   :  { %s547_s0 = inlined_call_operand.vmem [shape: f32[128,128], index: 0, kind: input, shape index: {}]   ;;  %s548_s2 = inlined_call_operand.vmem [shape: f32[128,128], index: 2, kind: input, shape index: {}]   ;;  %s549_s1 = inlined_call_operand.vmem [shape: f32[128,128], index: 1, kind: input, shape index: {}]   ;;  %s550_s3 = inlined_call_operand.vmem [shape: f32[1,128], index: 3, kind: output, shape index: {}]  }
   0x1   :  { %v45_v0 = vld [vmem:[%s547_s0 + $0x78] sm:$0xff]  ;;  %v44_v1 = vld [vmem:[%s547_s0 + $0x70] sm:$0xff]  ;;  %v43_v2 = vld [vmem:[%s547_s0 + $0x68] sm:$0xff] }
   0x2   :  { %288 = vmatprep.subr.mxu0 %v45_v0  ;;  %344 = vmatprep.subr.mxu1 %v45_v0  ;;  %v42_v3 = vld [vmem:[%s547_s0 + $0x60] sm:$0xff]  ;;  %v41_v4 = vld [vmem:[%s547_s0 + $0x58] sm:$0xff]  ;;  %v40_v5 = vld [vmem:[%s547_s0 + $0x50] sm:$0xff] }
   0x3   :  { %289 = vmatpush3.msra.mxu0 %v45_v0  ;;  %360 = vmatpush3.msra.mxu1 %v45_v0  ;;  %v39_v6 = vld [vmem:[%s547_s0 + $0x48] sm:$0xff]  ;;  %v38_v7 = vld [vmem:[%s547_s0 + $0x40] sm:$0xff]  ;;  %v37_v8 = vld [vmem:[%s547_s0 + $0x38] sm:$0xff] }
   0x4   :  { %290 = vmatprep.subr.mxu0 %v44_v1  ;;  %345 = vmatprep.subr.mxu1 %v44_v1  ;;  %v36_v9 = vld [vmem:[%s547_s0 + $0x30] sm:$0xff]  ;;  %v14_v10 = vld [vmem:[%s548_s2] sm:$0xff]  ;;  %v35_v11 = vld [vmem:[%s547_s0 + $0x28] sm:$0xff] }
   0x5   :  { %291 = vmatpush3.msra.mxu0 %v44_v1  ;;  %361 = vmatpush3.msra.mxu1 %v44_v1  ;;  %v34_v12 = vld [vmem:[%s547_s0 + $0x20] sm:$0xff]  ;;  %v33_v13 = vld [vmem:[%s547_s0 + $0x18] sm:$0xff]  ;;  %v32_v14 = vld [vmem:[%s547_s0 + $0x10] sm:$0xff] }
   0x6   :  { %292 = vmatprep.subr.mxu0 %v43_v2  ;;  %346 = vmatprep.subr.mxu1 %v43_v2  ;;  %v31_v15 = vld [vmem:[%s547_s0 + $0x8] sm:$0xff]  ;;  %v30_v16 = vld [vmem:[%s547_s0] sm:$0xff]  ;;  %v16_v18 = vld [vmem:[%s548_s2 + $0x10] sm:$0xff] }
   0x7   :  { %293 = vmatpush3.msra.mxu0 %v43_v2  ;;  %362 = vmatpush3.msra.mxu1 %v43_v2  ;;  %v15_v17 = vld [vmem:[%s548_s2 + $0x8] sm:$0xff]  ;;  %v22_v19 = vld [vmem:[%s548_s2 + $0x40] sm:$0xff]  ;;  %v24_v21 = vld [vmem:[%s548_s2 + $0x50] sm:$0xff] }
   0x8   :  { %294 = vmatprep.subr.mxu0 %v42_v3  ;;  %347 = vmatprep.subr.mxu1 %v42_v3  ;;  %v23_v20 = vld [vmem:[%s548_s2 + $0x48] sm:$0xff]  ;;  %v17_v22 = vld [vmem:[%s548_s2 + $0x18] sm:$0xff]  ;;  %v18_v23 = vld [vmem:[%s548_s2 + $0x20] sm:$0xff] }
   0x9   :  { %295 = vmatpush3.msra.mxu0 %v42_v3  ;;  %363 = vmatpush3.msra.mxu1 %v42_v3  ;;  %v25_v24 = vld [vmem:[%s548_s2 + $0x58] sm:$0xff]  ;;  %v26_v25 = vld [vmem:[%s548_s2 + $0x60] sm:$0xff]  ;;  %v19_v26 = vld [vmem:[%s548_s2 + $0x28] sm:$0xff] }
   0xa   :  { %296 = vmatprep.subr.mxu0 %v41_v4  ;;  %348 = vmatprep.subr.mxu1 %v41_v4  ;;  %v20_v27 = vld [vmem:[%s548_s2 + $0x30] sm:$0xff]  ;;  %v27_v28 = vld [vmem:[%s548_s2 + $0x68] sm:$0xff]  ;;  %v21_v30 = vld [vmem:[%s548_s2 + $0x38] sm:$0xff] }
   0xb   :  { %297 = vmatpush3.msra.mxu0 %v41_v4  ;;  %364 = vmatpush3.msra.mxu1 %v41_v4  ;;  %v28_v29 = vld [vmem:[%s548_s2 + $0x70] sm:$0xff]  ;;  %v29_v31 = vld [vmem:[%s548_s2 + $0x78] sm:$0xff]  ;;  %v191_v33 = vld [vmem:[%s549_s1] sm:$0xff] }
   0xc   :  { %298 = vmatprep.subr.mxu0 %v40_v5  ;;  %349 = vmatprep.subr.mxu1 %v40_v5  ;;  %v192_v34 = vld [vmem:[%s549_s1 + $0x8] sm:$0xff]  ;;  %v193_v39 = vld [vmem:[%s549_s1 + $0x10] sm:$0xff]  ;;  %v194_v42 = vld [vmem:[%s549_s1 + $0x18] sm:$0xff] }
   0xd   :  { %299 = vmatpush3.msra.mxu0 %v40_v5  ;;  %365 = vmatpush3.msra.mxu1 %v40_v5  ;;  %v195_v47 = vld [vmem:[%s549_s1 + $0x20] sm:$0xff]  ;;  %v196_v51 = vld [vmem:[%s549_s1 + $0x28] sm:$0xff]  ;;  %v197_v56 = vld [vmem:[%s549_s1 + $0x30] sm:$0xff] }
   0xe   :  { %300 = vmatprep.subr.mxu0 %v39_v6  ;;  %350 = vmatprep.subr.mxu1 %v39_v6  ;;  %v198_v60 = vld [vmem:[%s549_s1 + $0x38] sm:$0xff]  ;;  %v199_v0 = vld [vmem:[%s549_s1 + $0x40] sm:$0xff]  ;;  %v200_v4 = vld [vmem:[%s549_s1 + $0x48] sm:$0xff] }
   0xf   :  { %301 = vmatpush3.msra.mxu0 %v39_v6  ;;  %366 = vmatpush3.msra.mxu1 %v39_v6 }
  0x10   :  { %302 = vmatprep.subr.mxu0 %v38_v7  ;;  %351 = vmatprep.subr.mxu1 %v38_v7 }
  0x11   :  { %303 = vmatpush3.msra.mxu0 %v38_v7  ;;  %367 = vmatpush3.msra.mxu1 %v38_v7  ;;  %v201_v7 = vld [vmem:[%s549_s1 + $0x50] sm:$0xff] }
  0x12   :  { %304 = vmatprep.subr.mxu0 %v37_v8  ;;  %352 = vmatprep.subr.mxu1 %v37_v8 }
  0x13   :  { %305 = vmatpush3.msra.mxu0 %v37_v8  ;;  %368 = vmatpush3.msra.mxu1 %v37_v8 }
  0x14   :  { %306 = vmatprep.subr.mxu0 %v36_v9  ;;  %320 = vmatprep.mubr.f32.mxu0 %v14_v10 }
  0x15   :  { %307 = vmatpush3.msra.mxu0 %v36_v9  ;;  %353 = vmatprep.subr.mxu1 %v36_v9 }
  0x16   :  { %308 = vmatprep.subr.mxu0 %v35_v11  ;;  %369 = vmatpush3.msra.mxu1 %v36_v9 }
  0x17   :  { %309 = vmatpush3.msra.mxu0 %v35_v11  ;;  %354 = vmatprep.subr.mxu1 %v35_v11 }
  0x18   :  { %310 = vmatprep.subr.mxu0 %v34_v12  ;;  %370 = vmatpush3.msra.mxu1 %v35_v11  ;;  %v202_v11 = vld [vmem:[%s549_s1 + $0x58] sm:$0xff] }
  0x19   :  { %311 = vmatpush3.msra.mxu0 %v34_v12  ;;  %355 = vmatprep.subr.mxu1 %v34_v12 }
  0x1a   :  { %312 = vmatprep.subr.mxu0 %v33_v13  ;;  %371 = vmatpush3.msra.mxu1 %v34_v12 }
  0x1b   :  { %313 = vmatpush3.msra.mxu0 %v33_v13  ;;  %356 = vmatprep.subr.mxu1 %v33_v13 }
  0x1c   :  { %314 = vmatprep.subr.mxu0 %v32_v14  ;;  %372 = vmatpush3.msra.mxu1 %v33_v13 }
  0x1d   :  { %315 = vmatpush3.msra.mxu0 %v32_v14  ;;  %357 = vmatprep.subr.mxu1 %v32_v14 }
  0x1e   :  { %316 = vmatprep.subr.mxu0 %v31_v15  ;;  %373 = vmatpush3.msra.mxu1 %v32_v14  ;;  %v203_v14 = vld [vmem:[%s549_s1 + $0x60] sm:$0xff] }
  0x1f   :  { %317 = vmatpush3.msra.mxu0 %v31_v15  ;;  %358 = vmatprep.subr.mxu1 %v31_v15 }
  0x20   :  { %318 = vmatprep.subr.mxu0 %v30_v16  ;;  %374 = vmatpush3.msra.mxu1 %v31_v15 }
  0x21   :  { %319 = vmatpush3.msra.mxu0 %v30_v16  ;;  %359 = vmatprep.subr.mxu1 %v30_v16 }
  0x22   :  { %321 = vmatmul.mubr.f32.vlgmr.msra.gmra.mxu0 %v15_v17  ;;  %375 = vmatpush3.msra.mxu1 %v30_v16 }
  0x23   :  { %323 = vmatprep.mubr.f32.mxu0 %v16_v18  ;;  %332 = vmatprep.mubr.f32.mxu1 %v22_v19  ;;  %v204_v18 = vld [vmem:[%s549_s1 + $0x68] sm:$0xff] }
  0x24   :  { %333 = vmatmul.mubr.f32.vlgmr.msra.gmra.mxu1 %v23_v20 }
  0x25   :  { %335 = vmatprep.mubr.f32.mxu1 %v24_v21 }
  0x26   :  { %324 = vmatmul.mubr.f32.gmra.mxu0 %v17_v22  ;;  %v205_v22 = vld [vmem:[%s549_s1 + $0x70] sm:$0xff] }
  0x27   :  { %326 = vmatprep.mubr.f32.mxu0 %v18_v23 }
  0x28   :  { %336 = vmatmul.mubr.f32.gmra.mxu1 %v25_v24 }
  0x29   :  { %338 = vmatprep.mubr.f32.mxu1 %v26_v25  ;;  %v206_v25 = vld [vmem:[%s549_s1 + $0x78] sm:$0xff] }
  0x2a   :  { %327 = vmatmul.mubr.f32.gmra.mxu0 %v19_v26 }
  0x2b   :  { %329 = vmatprep.mubr.f32.mxu0 %v20_v27 }
  0x2c   :  { %339 = vmatmul.mubr.f32.gmra.mxu1 %v27_v28 }
  0x2d   :  { %341 = vmatprep.mubr.f32.mxu1 %v28_v29 }
  0x2e   :  { %330 = vmatmul.mubr.f32.gmra.mxu0 %v21_v30 }
  0x30   :  { %342 = vmatmul.mubr.f32.gmra.mxu1 %v29_v31 }
  0xe2   :  { %v322_v32 = vpop.f32.mrf.mxu0 }
  0xe3   :  { %v208_v41 = vmul.f32 %v322_v32, %v192_v34 }
  0xe4   :  { %v112_v35 = vpop.f32.mrf.mxu0  ;;  %v334_v36 = vpop.f32.mrf.mxu1 }
  0xe5   :  { %v207_v37 = vmul.f32 %v191_v33, %v112_v35  ;;  %v216_v9 = vmul.f32 %v334_v36, %v200_v4 }
  0xe6   :  { %v325_v38 = vpop.f32.mrf.mxu0  ;;  %v152_v40 = vpop.f32.mrf.mxu1 }
  0xe7   :  { %v223_v44 = vadd.f32 %v208_v41, %v207_v37  ;;  %v210_v49 = vmul.f32 %v325_v38, %v194_v42  ;;  %v215_v5 = vmul.f32 %v199_v0, %v152_v40 }
  0xe8   :  { %v122_v43 = vpop.f32.mrf.mxu0  ;;  %v337_v48 = vpop.f32.mrf.mxu1 }
  0xe9   :  { %v209_v45 = vmul.f32 %v193_v39, %v122_v43  ;;  %v218_v16 = vmul.f32 %v337_v48, %v202_v11 }
  0xea   :  { %v328_v46 = vpop.f32.mrf.mxu0  ;;  %v162_v57 = vpop.f32.mrf.mxu1 }
  0xeb   :  { %v224_v50 = vadd.f32 %v223_v44, %v209_v45  ;;  %v212_v58 = vmul.f32 %v328_v46, %v196_v51  ;;  %v217_v12 = vmul.f32 %v201_v7, %v162_v57 }
  0xec   :  { %v132_v52 = vpop.f32.mrf.mxu0  ;;  %v340_v1 = vpop.f32.mrf.mxu1 }
  0xed   :  { %v211_v53 = vmul.f32 %v195_v47, %v132_v52  ;;  %v225_v54 = vadd.f32 %v224_v50, %v210_v49  ;;  %v220_v23 = vmul.f32 %v340_v1, %v204_v18 }
  0xee   :  { %v331_v55 = vpop.f32.mrf.mxu0  ;;  %v172_v8 = vpop.f32.mrf.mxu1 }
  0xef   :  { %v226_v59 = vadd.f32 %v225_v54, %v211_v53  ;;  %v214_v2 = vmul.f32 %v331_v55, %v198_v60  ;;  %v219_v19 = vmul.f32 %v203_v14, %v172_v8 }
  0xf0   :  { %v142_v61 = vpop.f32.mrf.mxu0  ;;  %v343_v15 = vpop.f32.mrf.mxu1 }
  0xf1   :  { %v213_v62 = vmul.f32 %v197_v56, %v142_v61  ;;  %v227_v63 = vadd.f32 %v226_v59, %v212_v58  ;;  %v222_v28 = vmul.f32 %v343_v15, %v206_v25 }
  0xf2   :  { %v182_v21 = vpop.f32.mrf.mxu1 }
  0xf3   :  { %v228_v3 = vadd.f32 %v227_v63, %v213_v62  ;;  %v221_v26 = vmul.f32 %v205_v22, %v182_v21 }
  0xf5   :  { %v229_v6 = vadd.f32 %v228_v3, %v214_v2 }
  0xf7   :  { %v230_v10 = vadd.f32 %v229_v6, %v215_v5 }
  0xf9   :  { %v231_v13 = vadd.f32 %v230_v10, %v216_v9 }
  0xfb   :  { %v232_v17 = vadd.f32 %v231_v13, %v217_v12 }
  0xfd   :  { %v233_v20 = vadd.f32 %v232_v17, %v218_v16 }
  0xff   :  { %v234_v24 = vadd.f32 %v233_v20, %v219_v19 }
 0x101   :  { %v235_v27 = vadd.f32 %v234_v24, %v220_v23 }
 0x103   :  { %v236_v29 = vadd.f32 %v235_v27, %v221_v26 }
 0x105   :  { %v237_v30 = vadd.f32 %v236_v29, %v222_v28 }
 0x107   :  { %v238_v31 = vrot.slane %v237_v30, 4 }
 0x109   :  { %v239_v32 = vadd.f32 %v238_v31, %v237_v30 }
 0x10b   :  { %v240_v33 = vrot.slane %v239_v32, 2 }
 0x10d   :  { %v241_v34 = vadd.f32 %v240_v33, %v239_v32 }
 0x10f   :  { %v242_v35 = vrot.slane %v241_v34, 1 }
 0x111   :  { %v243_v36 = vadd.f32 %v242_v35, %v241_v34 }
 0x113   :  { %v255_v37 = vmul.f32 -1.442695, %v243_v36 }
 0x115   :  { %376 = vpow2.f32 %v255_v37 }
 0x122   :  { %v377_v38 = vpop.eup %376 }
 0x123   :  { %v247_v39 = vadd.f32 1.0, %v377_v38 }
 0x125   :  { %378 = vrcp.f32 %v247_v39 }
 0x132   :  { %v379_v40 = vpop.eup %378 }
 0x133   :  { %250 = vst [vmem:[%s550_s3] sm:$0x1] %v379_v40 }

</bundles_post_ra>
